<compile_context>
chip_gen: v5e
topology: v5e:2x2
jax: 0.10.0
libtpu: 0.0.40
codegen_flags: <defaults>
</compile_context>

<pallas_src>
import jax
import jax.numpy as jnp
from jax.experimental import pallas as pl
from jax.experimental.pallas import tpu as pltpu

BN_EPS = 1e-5
PAD_DIM = 256          # uniform padded feature width (multiple of 128)


def _dqn_kernel(x_ref, w_ref, v_ref, out_ref):
    """One grid step = one full DQN batch (so BN statistics are exact).

    x_ref  : (1, B, D)   zero-padded input batch
    w_ref  : (L, D, D)   zero-padded (in -> out) weights for all layers
    v_ref  : (L, 3, D)   rows = [bias, bn_gamma, bn_beta] per layer
    out_ref: (1, B, D)   padded Q-values (first action_dim lanes are real)
    """
    num_layers = w_ref.shape[0]
    inv_n = 1.0 / x_ref.shape[1]          # 1 / batch (static)

    def layer(h, l, last):
        vl = v_ref[l]                                              # (3, D)
        h = jnp.dot(h, w_ref[l], preferred_element_type=jnp.float32) + vl[0:1, :]
        if last:
            return h                                               # output layer
        # ReLU
        h = jnp.maximum(h, 0.0)
        # BatchNorm1d (training mode): single-pass mean / biased variance
        s1 = jnp.sum(h, axis=0, keepdims=True)
        s2 = jnp.sum(h * h, axis=0, keepdims=True)
        mean = s1 * inv_n
        var = jnp.maximum(s2 * inv_n - mean * mean, 0.0)           # clamp >= 0
        # Fused affine on 1xD vectors: h * scale + shift
        scale = vl[1:2, :] * jax.lax.rsqrt(var + BN_EPS)
        shift = vl[2:3, :] - mean * scale
        return h * scale + shift

    h = x_ref[0]
    for l in range(num_layers - 1):        # hidden layers, unrolled at trace time
        h = layer(h, l, last=False)
    out_ref[0] = layer(h, num_layers - 1, last=True)


def dqn_forward(x, w_slab, v_slab, *, action_dim):
    """Run the DQN forward pass.

    x: (batch, state_dim) for one batch, or (num_batches, batch, state_dim) to
    fold many independent batches into one pallas_call (each trailing slab is a
    full BatchNorm batch, so statistics remain exact per batch).
    """
    if x.ndim == 1:
        # PyTorch forward unsqueezes 1-D inputs.  Note: BN with batch=1 is
        # degenerate (PyTorch would raise in training mode).
        x = x[None, :]
    squeeze = x.ndim == 2
    if squeeze:
        x = x[None]
    nb, batch, state_dim = x.shape
    num_layers, pad_dim, _ = w_slab.shape

    # Zero-pad features to the uniform lane width; zeros flow through the padded
    # weight rows/columns without affecting the real outputs.
    x_pad = jnp.pad(x.astype(jnp.float32),
                    ((0, 0), (0, 0), (0, pad_dim - state_dim)))

    flops = 2 * nb * batch * pad_dim * pad_dim * num_layers
    bytes_accessed = 4 * (x_pad.size + nb * batch * pad_dim
                          + w_slab.size + v_slab.size)

    out = pl.pallas_call(
        _dqn_kernel,
        out_shape=jax.ShapeDtypeStruct((nb, batch, pad_dim), jnp.float32),
        grid=(nb,),
        in_specs=[
            pl.BlockSpec((1, batch, pad_dim), lambda i: (i, 0, 0)),
            # Constant block index -> weight/vector slabs are fetched into VMEM
            # once and stay resident for every grid step.
            pl.BlockSpec(w_slab.shape, lambda i: (0, 0, 0)),
            pl.BlockSpec(v_slab.shape, lambda i: (0, 0, 0)),
        ],
        out_specs=pl.BlockSpec((1, batch, pad_dim), lambda i: (i, 0, 0)),
        compiler_params=pltpu.CompilerParams(
            dimension_semantics=("parallel",)),        # lets both v7x TCs run
        cost_estimate=pl.CostEstimate(
            flops=flops,
            transcendentals=nb * (num_layers - 1) * pad_dim,   # rsqrt lanes
            bytes_accessed=bytes_accessed),
    )(x_pad, w_slab, v_slab)

    q = out[:, :, :action_dim]
    return q[0] if squeeze else q


def init_params(key, state_dim, action_dim, hidden_dims=(256, 256, 128)):
    """Deterministic Kaiming-normal init matching the PyTorch module."""
    dims = [state_dim] + list(hidden_dims)
    params = {}
    keys = jax.random.split(key, len(hidden_dims) + 1)
    for i, (fan_in, fan_out) in enumerate(zip(dims[:-1], dims[1:])):
        std = (2.0 / fan_in) ** 0.5                      # kaiming_normal_, relu
        w = jax.random.normal(keys[i], (fan_out, fan_in), jnp.float32) * std
        params[f"w{i+1}"] = w.T                          # pre-transposed (in, out)
        params[f"b{i+1}"] = jnp.zeros((fan_out,), jnp.float32)
        params[f"g{i+1}"] = jnp.ones((fan_out,), jnp.float32)    # BN weight
        params[f"be{i+1}"] = jnp.zeros((fan_out,), jnp.float32)  # BN bias
    fan_in = dims[-1]
    std = (2.0 / fan_in) ** 0.5
    w = jax.random.normal(keys[-1], (action_dim, fan_in), jnp.float32) * std
    params[f"w{len(hidden_dims)+1}"] = w.T
    params[f"b{len(hidden_dims)+1}"] = jnp.zeros((action_dim,), jnp.float32)
    return params


def pack_params(params, state_dim, action_dim,
                hidden_dims=(256, 256, 128), pad_dim=PAD_DIM):
    """Pack all layers into two zero-padded slabs (done once, outside the kernel)."""
    dims = [state_dim] + list(hidden_dims) + [action_dim]
    assert max(dims) <= pad_dim
    num_layers = len(dims) - 1
    w_slab = jnp.zeros((num_layers, pad_dim, pad_dim), jnp.float32)
    v_slab = jnp.zeros((num_layers, 3, pad_dim), jnp.float32)
    for l in range(num_layers):
        din, dout = dims[l], dims[l + 1]
        w_slab = w_slab.at[l, :din, :dout].set(params[f"w{l+1}"])
        v_slab = v_slab.at[l, 0, :dout].set(params[f"b{l+1}"])
        if l < num_layers - 1:                         # BN only on hidden layers
            v_slab = v_slab.at[l, 1, :dout].set(params[f"g{l+1}"])
            v_slab = v_slab.at[l, 2, :dout].set(params[f"be{l+1}"])
    return w_slab, v_slab


def dqn_forward_ref(x, params, num_hidden=3):
    """Pure-JAX reference (training-mode BatchNorm) for correctness check."""
    h = x
    for i in range(1, num_hidden + 1):
        h = h @ params[f"w{i}"] + params[f"b{i}"]
        h = jnp.maximum(h, 0.0)
        mean = jnp.mean(h, axis=0, keepdims=True)
        var = jnp.mean((h - mean) ** 2, axis=0, keepdims=True)
        h = (h - mean) / jnp.sqrt(var + BN_EPS) * params[f"g{i}"] + params[f"be{i}"]
    return h @ params[f"w{num_hidden+1}"] + params[f"b{num_hidden+1}"]


if __name__ == "__main__":
    STATE_DIM, ACTION_DIM = 32, 8
    HIDDEN = (256, 256, 128)
    NUM_BATCHES, BATCH = 4, 8         # 4 independent DQN batches folded into 1 call

    key = jax.random.PRNGKey(0)
    k_x, k_p = jax.random.split(key)
    params = init_params(k_p, STATE_DIM, ACTION_DIM, HIDDEN)
    w_slab, v_slab = pack_params(params, STATE_DIM, ACTION_DIM, HIDDEN)

    x = jax.random.normal(k_x, (NUM_BATCHES, BATCH, STATE_DIM), jnp.float32)

    # Multi-batch path: one pallas_call, grid over batches.
    q = dqn_forward(x, w_slab, v_slab, action_dim=ACTION_DIM)
    q = jax.block_until_ready(q)
    q_ref = jnp.stack([dqn_forward_ref(x[i], params) for i in range(NUM_BATCHES)])
    assert q.shape == (NUM_BATCHES, BATCH, ACTION_DIM)
    assert jnp.allclose(q, q_ref, atol=5e-4, rtol=5e-4), "mismatch vs JAX reference"

    # Single-batch path (matches the PyTorch module's (batch, state_dim) signature).
    q1 = dqn_forward(x[0], w_slab, v_slab, action_dim=ACTION_DIM)
    q1 = jax.block_until_ready(q1)
    assert q1.shape == (BATCH, ACTION_DIM)
    assert jnp.allclose(q1, dqn_forward_ref(x[0], params), atol=5e-4, rtol=5e-4)

    print("KERNEL_OK")
</pallas_src>

<mosaic_0001>
module attributes {stable_mosaic.version = 11 : i64} {
  func.func @_dqn_kernel(%arg0: i32, %arg1: memref<1x8x256xf32, #tpu.memory_space<vmem>>, %arg2: memref<4x256x256xf32, #tpu.memory_space<vmem>>, %arg3: memref<4x3x256xf32, #tpu.memory_space<vmem>>, %arg4: memref<1x8x256xf32, #tpu.memory_space<vmem>>) attributes {dimension_semantics = [#tpu.dimension_semantics<parallel>], iteration_bounds = array<i64: 4>, scalar_prefetch = 0 : i64, scratch_operands = 0 : i64, tpu.core_type = #tpu.core_type<tc>, window_params = [{transform_indices = @transform_0, window_bounds = array<i64: 1, 8, 256>}, {pipeline_mode = #tpu.pipeline_mode<synchronous>, transform_indices = @transform_1, window_bounds = array<i64: 4, 256, 256>}, {pipeline_mode = #tpu.pipeline_mode<synchronous>, transform_indices = @transform_2, window_bounds = array<i64: 4, 3, 256>}, {transform_indices = @transform_3, window_bounds = array<i64: 1, 8, 256>}]} {
    %c0 = arith.constant 0 : index
    %c0_0 = arith.constant 0 : index
    %c0_1 = arith.constant 0 : index
    %0 = vector.load %arg1[%c0, %c0_0, %c0_1] : memref<1x8x256xf32, #tpu.memory_space<vmem>>, vector<1x8x256xf32>
    %1 = vector.shape_cast %0 : vector<1x8x256xf32> to vector<8x256xf32>
    %c0_2 = arith.constant 0 : index
    %c0_3 = arith.constant 0 : index
    %c0_4 = arith.constant 0 : index
    %2 = vector.load %arg3[%c0_2, %c0_3, %c0_4] : memref<4x3x256xf32, #tpu.memory_space<vmem>>, vector<1x3x256xf32>
    %3 = vector.shape_cast %2 : vector<1x3x256xf32> to vector<3x256xf32>
    %c0_5 = arith.constant 0 : index
    %c0_6 = arith.constant 0 : index
    %c0_7 = arith.constant 0 : index
    %4 = vector.load %arg2[%c0_5, %c0_6, %c0_7] : memref<4x256x256xf32, #tpu.memory_space<vmem>>, vector<1x256x256xf32>
    %5 = vector.shape_cast %4 : vector<1x256x256xf32> to vector<256x256xf32>
    %cst = arith.constant dense<0.000000e+00> : vector<8x256xf32>
    %6 = tpu.matmul %1, %5, %cst {dimension_numbers = #tpu.dot_dimension_numbers<[1], [0], [0], [1], [0, 0, 1, 1], [], []>} : vector<8x256xf32>, vector<256x256xf32>, vector<8x256xf32> -> vector<8x256xf32>
    %7 = vector.extract_strided_slice %3 {offsets = [0, 0], sizes = [1, 256], strides = [1, 1]} : vector<3x256xf32> to vector<1x256xf32>
    %8 = vector.broadcast %7 : vector<1x256xf32> to vector<8x256xf32>
    %9 = arith.addf %6, %8 : vector<8x256xf32>
    %cst_8 = arith.constant 0.000000e+00 : f32
    %10 = vector.broadcast %cst_8 : f32 to vector<8x256xf32>
    %11 = arith.maximumf %9, %10 : vector<8x256xf32>
    %cst_9 = arith.constant dense<0.000000e+00> : vector<256xf32>
    %12 = vector.multi_reduction <add>, %11, %cst_9 [0] : vector<8x256xf32> to vector<256xf32>
    %13 = vector.shape_cast %12 : vector<256xf32> to vector<1x256xf32>
    %14 = arith.mulf %11, %11 : vector<8x256xf32>
    %cst_10 = arith.constant dense<0.000000e+00> : vector<256xf32>
    %15 = vector.multi_reduction <add>, %14, %cst_10 [0] : vector<8x256xf32> to vector<256xf32>
    %16 = vector.shape_cast %15 : vector<256xf32> to vector<1x256xf32>
    %cst_11 = arith.constant 1.250000e-01 : f32
    %17 = vector.broadcast %cst_11 : f32 to vector<1x256xf32>
    %18 = arith.mulf %13, %17 : vector<1x256xf32>
    %cst_12 = arith.constant 1.250000e-01 : f32
    %19 = vector.broadcast %cst_12 : f32 to vector<1x256xf32>
    %20 = arith.mulf %16, %19 : vector<1x256xf32>
    %21 = arith.mulf %18, %18 : vector<1x256xf32>
    %22 = arith.subf %20, %21 : vector<1x256xf32>
    %cst_13 = arith.constant 0.000000e+00 : f32
    %23 = vector.broadcast %cst_13 : f32 to vector<1x256xf32>
    %24 = arith.maximumf %22, %23 : vector<1x256xf32>
    %25 = vector.extract_strided_slice %3 {offsets = [1, 0], sizes = [1, 256], strides = [1, 1]} : vector<3x256xf32> to vector<1x256xf32>
    %cst_14 = arith.constant 9.99999974E-6 : f32
    %26 = vector.broadcast %cst_14 : f32 to vector<1x256xf32>
    %27 = arith.addf %24, %26 : vector<1x256xf32>
    %28 = math.rsqrt %27 : vector<1x256xf32>
    %29 = arith.mulf %25, %28 : vector<1x256xf32>
    %30 = vector.extract_strided_slice %3 {offsets = [2, 0], sizes = [1, 256], strides = [1, 1]} : vector<3x256xf32> to vector<1x256xf32>
    %31 = arith.mulf %18, %29 : vector<1x256xf32>
    %32 = arith.subf %30, %31 : vector<1x256xf32>
    %33 = vector.broadcast %29 : vector<1x256xf32> to vector<8x256xf32>
    %34 = arith.mulf %11, %33 : vector<8x256xf32>
    %35 = vector.broadcast %32 : vector<1x256xf32> to vector<8x256xf32>
    %36 = arith.addf %34, %35 : vector<8x256xf32>
    %c1 = arith.constant 1 : index
    %c0_15 = arith.constant 0 : index
    %c0_16 = arith.constant 0 : index
    %37 = vector.load %arg3[%c1, %c0_15, %c0_16] : memref<4x3x256xf32, #tpu.memory_space<vmem>>, vector<1x3x256xf32>
    %38 = vector.shape_cast %37 : vector<1x3x256xf32> to vector<3x256xf32>
    %c1_17 = arith.constant 1 : index
    %c0_18 = arith.constant 0 : index
    %c0_19 = arith.constant 0 : index
    %39 = vector.load %arg2[%c1_17, %c0_18, %c0_19] : memref<4x256x256xf32, #tpu.memory_space<vmem>>, vector<1x256x256xf32>
    %40 = vector.shape_cast %39 : vector<1x256x256xf32> to vector<256x256xf32>
    %cst_20 = arith.constant dense<0.000000e+00> : vector<8x256xf32>
    %41 = tpu.matmul %36, %40, %cst_20 {dimension_numbers = #tpu.dot_dimension_numbers<[1], [0], [0], [1], [0, 0, 1, 1], [], []>} : vector<8x256xf32>, vector<256x256xf32>, vector<8x256xf32> -> vector<8x256xf32>
    %42 = vector.extract_strided_slice %38 {offsets = [0, 0], sizes = [1, 256], strides = [1, 1]} : vector<3x256xf32> to vector<1x256xf32>
    %43 = vector.broadcast %42 : vector<1x256xf32> to vector<8x256xf32>
    %44 = arith.addf %41, %43 : vector<8x256xf32>
    %cst_21 = arith.constant 0.000000e+00 : f32
    %45 = vector.broadcast %cst_21 : f32 to vector<8x256xf32>
    %46 = arith.maximumf %44, %45 : vector<8x256xf32>
    %cst_22 = arith.constant dense<0.000000e+00> : vector<256xf32>
    %47 = vector.multi_reduction <add>, %46, %cst_22 [0] : vector<8x256xf32> to vector<256xf32>
    %48 = vector.shape_cast %47 : vector<256xf32> to vector<1x256xf32>
    %49 = arith.mulf %46, %46 : vector<8x256xf32>
    %cst_23 = arith.constant dense<0.000000e+00> : vector<256xf32>
    %50 = vector.multi_reduction <add>, %49, %cst_23 [0] : vector<8x256xf32> to vector<256xf32>
    %51 = vector.shape_cast %50 : vector<256xf32> to vector<1x256xf32>
    %cst_24 = arith.constant 1.250000e-01 : f32
    %52 = vector.broadcast %cst_24 : f32 to vector<1x256xf32>
    %53 = arith.mulf %48, %52 : vector<1x256xf32>
    %cst_25 = arith.constant 1.250000e-01 : f32
    %54 = vector.broadcast %cst_25 : f32 to vector<1x256xf32>
    %55 = arith.mulf %51, %54 : vector<1x256xf32>
    %56 = arith.mulf %53, %53 : vector<1x256xf32>
    %57 = arith.subf %55, %56 : vector<1x256xf32>
    %cst_26 = arith.constant 0.000000e+00 : f32
    %58 = vector.broadcast %cst_26 : f32 to vector<1x256xf32>
    %59 = arith.maximumf %57, %58 : vector<1x256xf32>
    %60 = vector.extract_strided_slice %38 {offsets = [1, 0], sizes = [1, 256], strides = [1, 1]} : vector<3x256xf32> to vector<1x256xf32>
    %cst_27 = arith.constant 9.99999974E-6 : f32
    %61 = vector.broadcast %cst_27 : f32 to vector<1x256xf32>
    %62 = arith.addf %59, %61 : vector<1x256xf32>
    %63 = math.rsqrt %62 : vector<1x256xf32>
    %64 = arith.mulf %60, %63 : vector<1x256xf32>
    %65 = vector.extract_strided_slice %38 {offsets = [2, 0], sizes = [1, 256], strides = [1, 1]} : vector<3x256xf32> to vector<1x256xf32>
    %66 = arith.mulf %53, %64 : vector<1x256xf32>
    %67 = arith.subf %65, %66 : vector<1x256xf32>
    %68 = vector.broadcast %64 : vector<1x256xf32> to vector<8x256xf32>
    %69 = arith.mulf %46, %68 : vector<8x256xf32>
    %70 = vector.broadcast %67 : vector<1x256xf32> to vector<8x256xf32>
    %71 = arith.addf %69, %70 : vector<8x256xf32>
    %c2 = arith.constant 2 : index
    %c0_28 = arith.constant 0 : index
    %c0_29 = arith.constant 0 : index
    %72 = vector.load %arg3[%c2, %c0_28, %c0_29] : memref<4x3x256xf32, #tpu.memory_space<vmem>>, vector<1x3x256xf32>
    %73 = vector.shape_cast %72 : vector<1x3x256xf32> to vector<3x256xf32>
    %c2_30 = arith.constant 2 : index
    %c0_31 = arith.constant 0 : index
    %c0_32 = arith.constant 0 : index
    %74 = vector.load %arg2[%c2_30, %c0_31, %c0_32] : memref<4x256x256xf32, #tpu.memory_space<vmem>>, vector<1x256x256xf32>
    %75 = vector.shape_cast %74 : vector<1x256x256xf32> to vector<256x256xf32>
    %cst_33 = arith.constant dense<0.000000e+00> : vector<8x256xf32>
    %76 = tpu.matmul %71, %75, %cst_33 {dimension_numbers = #tpu.dot_dimension_numbers<[1], [0], [0], [1], [0, 0, 1, 1], [], []>} : vector<8x256xf32>, vector<256x256xf32>, vector<8x256xf32> -> vector<8x256xf32>
    %77 = vector.extract_strided_slice %73 {offsets = [0, 0], sizes = [1, 256], strides = [1, 1]} : vector<3x256xf32> to vector<1x256xf32>
    %78 = vector.broadcast %77 : vector<1x256xf32> to vector<8x256xf32>
    %79 = arith.addf %76, %78 : vector<8x256xf32>
    %cst_34 = arith.constant 0.000000e+00 : f32
    %80 = vector.broadcast %cst_34 : f32 to vector<8x256xf32>
    %81 = arith.maximumf %79, %80 : vector<8x256xf32>
    %cst_35 = arith.constant dense<0.000000e+00> : vector<256xf32>
    %82 = vector.multi_reduction <add>, %81, %cst_35 [0] : vector<8x256xf32> to vector<256xf32>
    %83 = vector.shape_cast %82 : vector<256xf32> to vector<1x256xf32>
    %84 = arith.mulf %81, %81 : vector<8x256xf32>
    %cst_36 = arith.constant dense<0.000000e+00> : vector<256xf32>
    %85 = vector.multi_reduction <add>, %84, %cst_36 [0] : vector<8x256xf32> to vector<256xf32>
    %86 = vector.shape_cast %85 : vector<256xf32> to vector<1x256xf32>
    %cst_37 = arith.constant 1.250000e-01 : f32
    %87 = vector.broadcast %cst_37 : f32 to vector<1x256xf32>
    %88 = arith.mulf %83, %87 : vector<1x256xf32>
    %cst_38 = arith.constant 1.250000e-01 : f32
    %89 = vector.broadcast %cst_38 : f32 to vector<1x256xf32>
    %90 = arith.mulf %86, %89 : vector<1x256xf32>
    %91 = arith.mulf %88, %88 : vector<1x256xf32>
    %92 = arith.subf %90, %91 : vector<1x256xf32>
    %cst_39 = arith.constant 0.000000e+00 : f32
    %93 = vector.broadcast %cst_39 : f32 to vector<1x256xf32>
    %94 = arith.maximumf %92, %93 : vector<1x256xf32>
    %95 = vector.extract_strided_slice %73 {offsets = [1, 0], sizes = [1, 256], strides = [1, 1]} : vector<3x256xf32> to vector<1x256xf32>
    %cst_40 = arith.constant 9.99999974E-6 : f32
    %96 = vector.broadcast %cst_40 : f32 to vector<1x256xf32>
    %97 = arith.addf %94, %96 : vector<1x256xf32>
    %98 = math.rsqrt %97 : vector<1x256xf32>
    %99 = arith.mulf %95, %98 : vector<1x256xf32>
    %100 = vector.extract_strided_slice %73 {offsets = [2, 0], sizes = [1, 256], strides = [1, 1]} : vector<3x256xf32> to vector<1x256xf32>
    %101 = arith.mulf %88, %99 : vector<1x256xf32>
    %102 = arith.subf %100, %101 : vector<1x256xf32>
    %103 = vector.broadcast %99 : vector<1x256xf32> to vector<8x256xf32>
    %104 = arith.mulf %81, %103 : vector<8x256xf32>
    %105 = vector.broadcast %102 : vector<1x256xf32> to vector<8x256xf32>
    %106 = arith.addf %104, %105 : vector<8x256xf32>
    %c3 = arith.constant 3 : index
    %c0_41 = arith.constant 0 : index
    %c0_42 = arith.constant 0 : index
    %107 = vector.load %arg3[%c3, %c0_41, %c0_42] : memref<4x3x256xf32, #tpu.memory_space<vmem>>, vector<1x3x256xf32>
    %108 = vector.shape_cast %107 : vector<1x3x256xf32> to vector<3x256xf32>
    %c3_43 = arith.constant 3 : index
    %c0_44 = arith.constant 0 : index
    %c0_45 = arith.constant 0 : index
    %109 = vector.load %arg2[%c3_43, %c0_44, %c0_45] : memref<4x256x256xf32, #tpu.memory_space<vmem>>, vector<1x256x256xf32>
    %110 = vector.shape_cast %109 : vector<1x256x256xf32> to vector<256x256xf32>
    %cst_46 = arith.constant dense<0.000000e+00> : vector<8x256xf32>
    %111 = tpu.matmul %106, %110, %cst_46 {dimension_numbers = #tpu.dot_dimension_numbers<[1], [0], [0], [1], [0, 0, 1, 1], [], []>} : vector<8x256xf32>, vector<256x256xf32>, vector<8x256xf32> -> vector<8x256xf32>
    %112 = vector.extract_strided_slice %108 {offsets = [0, 0], sizes = [1, 256], strides = [1, 1]} : vector<3x256xf32> to vector<1x256xf32>
    %113 = vector.broadcast %112 : vector<1x256xf32> to vector<8x256xf32>
    %114 = arith.addf %111, %113 : vector<8x256xf32>
    %c0_47 = arith.constant 0 : index
    %c0_48 = arith.constant 0 : index
    %c0_49 = arith.constant 0 : index
    %115 = vector.load %arg4[%c0_47, %c0_48, %c0_49] : memref<1x8x256xf32, #tpu.memory_space<vmem>>, vector<1x8x256xf32>
    %116 = vector.shape_cast %115 : vector<1x8x256xf32> to vector<8x256xf32>
    %117 = vector.shape_cast %114 : vector<8x256xf32> to vector<1x8x256xf32>
    tpu.vector_store %arg4[%c0_47, %c0_48, %c0_49], %117 {strides = array<i32>} : memref<1x8x256xf32, #tpu.memory_space<vmem>>, vector<1x8x256xf32>,
    return
  }
  func.func @transform_0(%arg0: i32) -> (i32, i32, i32) {
    %c0_i32 = arith.constant 0 : i32
    %c0_i32_0 = arith.constant 0 : i32
    %c0_i32_1 = arith.constant 0 : i32
    return %arg0, %c0_i32, %c0_i32_0 : i32, i32, i32
  }
  func.func @transform_1(%arg0: i32) -> (i32, i32, i32) {
    %c0_i32 = arith.constant 0 : i32
    %c0_i32_0 = arith.constant 0 : i32
    %c0_i32_1 = arith.constant 0 : i32
    %c0_i32_2 = arith.constant 0 : i32
    return %c0_i32, %c0_i32_0, %c0_i32_1 : i32, i32, i32
  }
  func.func @transform_2(%arg0: i32) -> (i32, i32, i32) {
    %c0_i32 = arith.constant 0 : i32
    %c0_i32_0 = arith.constant 0 : i32
    %c0_i32_1 = arith.constant 0 : i32
    %c0_i32_2 = arith.constant 0 : i32
    return %c0_i32, %c0_i32_0, %c0_i32_1 : i32, i32, i32
  }
  func.func @transform_3(%arg0: i32) -> (i32, i32, i32) {
    %c0_i32 = arith.constant 0 : i32
    %c0_i32_0 = arith.constant 0 : i32
    %c0_i32_1 = arith.constant 0 : i32
    return %arg0, %c0_i32, %c0_i32_0 : i32, i32, i32
  }
}

</mosaic_0001>

<bundles_post_ra>
// kernel: tpu_custom_call.1
= control target key start
LH: loop header
LB: loop body
LE: loop exit
PB: predicated region body
PF: predicated region fallthrough
CT: control target
= control target key end

     0   :  { %8 = vsyncpa [#allocation3], 0  ;;  %s1752_s0 = inlined_call_operand.hbm [shape: f32[4,8,256], index: 0, kind: input, shape index: {}]   ;;  %s1753_s1 = inlined_call_operand.hbm [shape: f32[4,256,256], index: 1, kind: input, shape index: {}]   ;;  %s1754_s2 = inlined_call_operand.vmem [shape: f32[4,3,256], index: 2, kind: input, shape index: {}]   ;;  %s1755_s3 = inlined_call_operand.hbm [shape: f32[4,8,256], index: 3, kind: output, shape index: {}]  }
   0x1   :  { %10 = vsyncpa [#allocation3 + $0x1], 0 }
   0x2   :  { %11 = vsyncpa [#allocation6], 0 }
   0x3   :  { %12 = vsyncpa [#allocation4], 0 }
   0x4   :  { %14 = vsyncpa [#allocation4 + $0x1], 0  ;;  %s1451_s12 = smov 0   ;;  %s1453_s13 = smov 0  }
   0x5   :  { %s1455_s14 = smov 0   ;;  %s1457_s15 = smov 0  }
   0x6 LB: > { %s130_s18 = sshll.u32 %s1753_s1, 4  ;;  %s1475_s19 = sadd.s32 4294967295, %s1426_s15   ;;  %s1426_s15 = sphi %s1457_s15, %s1764_s15   ;;  %s1422_s14 = sphi %s1455_s14, %s1763_s14   ;;  %s1418_s13 = sphi %s1453_s13, %s1762_s13   ;;  %s1414_s12 = sphi %s1451_s12, %s1761_s12   ;;  %s131_s18 = int_to_ptr.hbm [resolvable:$true] %s130_s18 }
   0x7   : > { %p1205_p0 = scmp.ge.s32.totalorder %s1426_s15, 1  ;;  %p41_p1 = scmp.eq.s32.totalorder %s1475_s19, 0 }
   0x8   : > { %p119_p2 = scmp.lt.s32.totalorder %s1426_s15, 5  ;;  %s1428_s21 = smov [#allocation5]  }
   0x9   : > { %s132_s22 = sshll.u32 %s1428_s21, 4  ;;  %s1429_s23 = smov 256   ;;  %s133_s22 = int_to_ptr.vmem [resolvable:$true] %s132_s22 }
   0xa   : > { %p1480_p3 = pnand %p1205_p0, %p119_p2  ;;  %s1430_s24 = smov 16  }
   0xb   : > { %s1204_s25 = sadd.s32 4294967294, %s1426_s15   ;;  %s1490_s26 = sadd.s32 1, %s1426_s15  }
   0xc   : > { %p1233_p4 = pneg %p1480_p3  ;;  %s27_s27 = sadd.s32 1, %s1422_s14 }
   0xd   : > { %s24_s28 = ssub.s32 %s1426_s15, %s1490_s26  ;;  %p34_p6 = scmp.ne.s32.totalorder %s1422_s14, %s1418_s13 }
   0xe   : > { %p1234_p5 = pnand %p1233_p4, %p41_p1  ;;  %p25_p7 = scmp.eq.s32.totalorder %s24_s28, 0 }
   0xf   : > { %p35_p8 = scmp.eq.s32.totalorder %s1426_s15, 0  ;;  %p40_p9 = scmp.ne.s32.totalorder %s1418_s13, %s1414_s12 }
  0x10   : > { %1236 = dma.hbm_to_vmem [thread:$0]  (!%p1234_p5), %s131_s18, 32768, %s133_s22, [#allocation6], %s1429_s23, %s1429_s23, %s1430_s24  }
  0x11   : > { %p106_p10 = scmp.eq.s32.totalorder %s1475_s19, 3  ;;  %p1506_p11 = por %p41_p1, %p40_p9 }
  0x12   : > { %s1502_s29 = scalar_select %p25_p7, %s1422_s14, %s27_s27  }
  0x13   : > { %p1510_p12 = por %p106_p10, %p34_p6  ;;  %p112_p13 = scmp.eq.s32.totalorder %s1204_s25, 3 }
  0x14   : > { %p36_p0 = por %p35_p8, %p34_p6  ;;  %s149_s5 = sand.u32 1, %s1422_s14  }
  0x15   : > { %p1515_p2 = por %p112_p13, %p40_p9  ;;  %p1246_p4 = scmp.lt.s32.totalorder %s1426_s15, 4 }
  0x16   : > { %s1208_s7 = sshll.u32 %s149_s5, 4  ;;  %s1223_s8 = sshll.u32 %s1426_s15, 4 }
  0x17   : > { %s158_s11 = scalar_lea.hbm %s1752_s0, %s1223_s8  ;;  %s153_s17 = scalar_lea.vmem [#allocation2], %s1208_s7 }
  0x18   : > { %s160_s16 = sshll.u32 %s158_s11, 4  ;;  %s162_s18 = sshll.u32 %s153_s17, 4  ;;  %s161_s16 = int_to_ptr.hbm [resolvable:$true] %s160_s16  ;;  %s163_s18 = int_to_ptr.vmem [resolvable:$true] %s162_s18 }
  0x19   : > { %p1524_p5 = pnand %p1246_p4, %p36_p0  ;;  %s150_s22 = scalar_lea.sflag [#allocation3], %s149_s5 }
  0x1a   : > { %s1326_s23 = sshra.s32 %s161_s16, 4  ;;  %s1333_s28 = scalar_lea.hbm %s1752_s0, 64  ;;  %s1327_s23 = int_to_ptr.hbm [resolvable:$true] %s1326_s23 }
  0x1b   : > { %s1328_s24 = scalar_lea.hbm %s1327_s23, 16  ;;  %p1330_p7 = pneg %p1524_p5 }
  0x1c   : > { %p1329_p6 = scmp.ne.s32.totalorder %s1327_s23, %s1328_s24  ;;  %p1334_p10 = scmp.lt.s32.totalorder %s1327_s23, %s1752_s0 }
  0x1d   : > { %p1335_p13 = scmp.lt.s32.totalorder %s1333_s28, %s1328_s24 }
  0x1e   : > { %p1331_p8 = pnand %p1330_p7, %p1329_p6 }
  0x1f   : > { %p1336_p0 = por %p1335_p13, %p1334_p10 }
  0x20   : > { %p1332_p9 = pneg %p1331_p8 }
  0x22   : > { %p1337_p4 = pnand %p1336_p0, %p1332_p9 }
  0x24   : > { %1340 = shalt.err (!%p1337_p4)
}
  0x25   : > { %1240 = dma.hbm_to_vmem [thread:$0]  (!%p1524_p5), %s161_s16, 256, %s163_s18, %s150_s22  }
  0x26   : > { %171 = sbr.rel (%p1480_p3) target bundleno = 827 (0x33b), region = 32  ;;  %s1541_s5 = sand.u32 (!%p1480_p3), 1, %s1418_s13  }
  0x27   : > { %s1212_s9 = sshll.u32 (!%p1480_p3), %s1541_s5, 4  ;;  %s174_s10 = scalar_lea.sflag (!%p1480_p3), [#allocation3], %s1541_s5 }
  0x28   : > { %s1547_s11 = scalar_lea.vmem (!%p1480_p3), [#allocation2], %s1212_s9 }
  0x2b   : > { %1401 = dma.done.wait (%p1506_p11), %s174_s10, 256  }
  0x2c   : > { %1403 = vsyncadd (%p1506_p11), %s174_s10, 4294967040 }
  0x2d   : > { %1405 = dma.done.wait (%p41_p1), [#allocation6], 32768  }
  0x2e   : > { %1407 = vsyncadd (%p41_p1), [#allocation6], 4294934528  ;;  %v239_v0 = vld [vmem:[#allocation5 + $0xf0] sm:$0xff]  ;;  %v240_v1 = vld [vmem:[#allocation5 + $0xf8] sm:$0xff]  ;;  %vm423_vm5 = vcmask 1043456   ;;  %s1224_s24 = sshll.u32 %s1475_s19, 4 }
  0x2f   : > { %v237_v2 = vld [vmem:[#allocation5 + $0xe0] sm:$0xff]  ;;  %280 = vmatpush.msra.mxu0 %v239_v0  ;;  %320 = vmatpush.msra.mxu2 %v240_v1  ;;  %v271_v3 = vld [vmem:[#allocation5 + $0x1f0] sm:$0xff]  ;;  %v238_v4 = vld [vmem:[#allocation5 + $0xe8] sm:$0xff]  ;;  %s1119_s28 = scalar_lea.hbm %s1755_s3, %s1224_s24  ;;  %s205_s7 = scalar_lea.vmem [#allocation7], %s1212_s9 }
  0x30   : > { %v272_v5 = vld [vmem:[#allocation5 + $0x1f8] sm:$0xff]  ;;  %300 = vmatpush.msra.mxu1 %v271_v3  ;;  %v235_v6 = vld [vmem:[#allocation5 + $0xd0] sm:$0xff]  ;;  %v269_v7 = vld [vmem:[#allocation5 + $0x1e0] sm:$0xff]  ;;  %s1121_s8 = sshll.u32 %s205_s7, 4  ;;  %s1123_s10 = sshll.u32 %s1119_s28, 4  ;;  %s1122_s8 = int_to_ptr.vmem [resolvable:$true] %s1121_s8  ;;  %s1124_s10 = int_to_ptr.hbm [resolvable:$true] %s1123_s10 }
  0x31   : > { %340 = vmatpush.msra.mxu3 %v272_v5  ;;  %v236_v8 = vld [vmem:[#allocation5 + $0xd8] sm:$0xff]  ;;  %281 = vmatpush.msra.mxu0 %v237_v2  ;;  %v270_v9 = vld [vmem:[#allocation5 + $0x1e8] sm:$0xff]  ;;  %v267_v10 = vld [vmem:[#allocation5 + $0x1d0] sm:$0xff]  ;;  %s1108_s19 = scalar_lea.sflag [#allocation4], %s1541_s5  ;;  %s1376_s16 = scalar_lea.hbm %s1755_s3, 64 }
  0x32   : > { %321 = vmatpush.msra.mxu2 %v238_v4  ;;  %301 = vmatpush.msra.mxu1 %v269_v7  ;;  %v233_v11 = vld [vmem:[#allocation5 + $0xc0] sm:$0xff]  ;;  %v234_v12 = vld [vmem:[#allocation5 + $0xc8] sm:$0xff]  ;;  %v268_v13 = vld [vmem:[#allocation5 + $0x1d8] sm:$0xff] }
  0x33   : > { %341 = vmatpush.msra.mxu3 %v270_v9  ;;  %282 = vmatpush.msra.mxu0 %v235_v6  ;;  %v265_v14 = vld [vmem:[#allocation5 + $0x1c0] sm:$0xff]  ;;  %v266_v15 = vld [vmem:[#allocation5 + $0x1c8] sm:$0xff]  ;;  %v231_v16 = vld [vmem:[#allocation5 + $0xb0] sm:$0xff] }
  0x34   : > { %322 = vmatpush.msra.mxu2 %v236_v8  ;;  %302 = vmatpush.msra.mxu1 %v267_v10  ;;  %v232_v17 = vld [vmem:[#allocation5 + $0xb8] sm:$0xff]  ;;  %v263_v18 = vld [vmem:[#allocation5 + $0x1b0] sm:$0xff]  ;;  %v229_v20 = vld [vmem:[#allocation5 + $0xa0] sm:$0xff] }
  0x35   : > { %342 = vmatpush.msra.mxu3 %v268_v13  ;;  %283 = vmatpush.msra.mxu0 %v233_v11  ;;  %v264_v19 = vld [vmem:[#allocation5 + $0x1b8] sm:$0xff]  ;;  %v230_v21 = vld [vmem:[#allocation5 + $0xa8] sm:$0xff]  ;;  %v261_v22 = vld [vmem:[#allocation5 + $0x1a0] sm:$0xff] }
  0x36   : > { %323 = vmatpush.msra.mxu2 %v234_v12  ;;  %303 = vmatpush.msra.mxu1 %v265_v14  ;;  %v262_v23 = vld [vmem:[#allocation5 + $0x1a8] sm:$0xff]  ;;  %v227_v24 = vld [vmem:[#allocation5 + $0x90] sm:$0xff]  ;;  %v228_v25 = vld [vmem:[#allocation5 + $0x98] sm:$0xff] }
  0x37   : > { %343 = vmatpush.msra.mxu3 %v266_v15  ;;  %284 = vmatpush.msra.mxu0 %v231_v16  ;;  %v259_v26 = vld [vmem:[#allocation5 + $0x190] sm:$0xff]  ;;  %v260_v27 = vld [vmem:[#allocation5 + $0x198] sm:$0xff]  ;;  %v225_v28 = vld [vmem:[#allocation5 + $0x80] sm:$0xff] }
  0x38   : > { %324 = vmatpush.msra.mxu2 %v232_v17  ;;  %304 = vmatpush.msra.mxu1 %v263_v18  ;;  %v226_v29 = vld [vmem:[#allocation5 + $0x88] sm:$0xff]  ;;  %v257_v30 = vld [vmem:[#allocation5 + $0x180] sm:$0xff]  ;;  %v223_v32 = vld [vmem:[#allocation5 + $0x70] sm:$0xff] }
  0x39   : > { %344 = vmatpush.msra.mxu3 %v264_v19  ;;  %285 = vmatpush.msra.mxu0 %v229_v20  ;;  %v258_v31 = vld [vmem:[#allocation5 + $0x188] sm:$0xff]  ;;  %v224_v33 = vld [vmem:[#allocation5 + $0x78] sm:$0xff]  ;;  %v255_v34 = vld [vmem:[#allocation5 + $0x170] sm:$0xff] }
  0x3a   : > { %325 = vmatpush.msra.mxu2 %v230_v21  ;;  %305 = vmatpush.msra.mxu1 %v261_v22  ;;  %v256_v35 = vld [vmem:[#allocation5 + $0x178] sm:$0xff]  ;;  %v221_v36 = vld [vmem:[#allocation5 + $0x60] sm:$0xff]  ;;  %v222_v37 = vld [vmem:[#allocation5 + $0x68] sm:$0xff] }
  0x3b   : > { %345 = vmatpush.msra.mxu3 %v262_v23  ;;  %286 = vmatpush.msra.mxu0 %v227_v24  ;;  %v253_v38 = vld [vmem:[#allocation5 + $0x160] sm:$0xff]  ;;  %v254_v39 = vld [vmem:[#allocation5 + $0x168] sm:$0xff]  ;;  %v219_v40 = vld [vmem:[#allocation5 + $0x50] sm:$0xff] }
  0x3c   : > { %326 = vmatpush.msra.mxu2 %v228_v25  ;;  %306 = vmatpush.msra.mxu1 %v259_v26  ;;  %v220_v41 = vld [vmem:[#allocation5 + $0x58] sm:$0xff]  ;;  %v251_v42 = vld [vmem:[#allocation5 + $0x150] sm:$0xff]  ;;  %v217_v44 = vld [vmem:[#allocation5 + $0x40] sm:$0xff] }
  0x3d   : > { %346 = vmatpush.msra.mxu3 %v260_v27  ;;  %287 = vmatpush.msra.mxu0 %v225_v28  ;;  %v252_v43 = vld [vmem:[#allocation5 + $0x158] sm:$0xff]  ;;  %v218_v45 = vld [vmem:[#allocation5 + $0x48] sm:$0xff]  ;;  %v249_v46 = vld [vmem:[#allocation5 + $0x140] sm:$0xff] }
  0x3e   : > { %327 = vmatpush.msra.mxu2 %v226_v29  ;;  %307 = vmatpush.msra.mxu1 %v257_v30  ;;  %v250_v47 = vld [vmem:[#allocation5 + $0x148] sm:$0xff]  ;;  %v215_v48 = vld [vmem:[#allocation5 + $0x30] sm:$0xff]  ;;  %v216_v49 = vld [vmem:[#allocation5 + $0x38] sm:$0xff] }
  0x3f   : > { %347 = vmatpush.msra.mxu3 %v258_v31  ;;  %288 = vmatpush.msra.mxu0 %v223_v32  ;;  %v247_v50 = vld [vmem:[#allocation5 + $0x130] sm:$0xff]  ;;  %v248_v51 = vld [vmem:[#allocation5 + $0x138] sm:$0xff]  ;;  %v213_v52 = vld [vmem:[#allocation5 + $0x20] sm:$0xff] }
  0x40   : > { %328 = vmatpush.msra.mxu2 %v224_v33  ;;  %308 = vmatpush.msra.mxu1 %v255_v34  ;;  %v214_v53 = vld [vmem:[#allocation5 + $0x28] sm:$0xff]  ;;  %v245_v54 = vld [vmem:[#allocation5 + $0x120] sm:$0xff]  ;;  %v211_v56 = vld [vmem:[#allocation5 + $0x10] sm:$0xff] }
  0x41   : > { %348 = vmatpush.msra.mxu3 %v256_v35  ;;  %289 = vmatpush.msra.mxu0 %v221_v36  ;;  %v246_v55 = vld [vmem:[#allocation5 + $0x128] sm:$0xff]  ;;  %v212_v57 = vld [vmem:[#allocation5 + $0x18] sm:$0xff]  ;;  %v243_v58 = vld [vmem:[#allocation5 + $0x110] sm:$0xff] }
  0x42   : > { %329 = vmatpush.msra.mxu2 %v222_v37  ;;  %309 = vmatpush.msra.mxu1 %v253_v38  ;;  %v244_v59 = vld [vmem:[#allocation5 + $0x118] sm:$0xff]  ;;  %v209_v60 = vld [vmem:[#allocation5] sm:$0xff]  ;;  %v210_v61 = vld [vmem:[#allocation5 + $0x8] sm:$0xff] }
  0x43   : > { %349 = vmatpush.msra.mxu3 %v254_v39  ;;  %290 = vmatpush.msra.mxu0 %v219_v40  ;;  %v206_v62 = vld [vmem:[%s1547_s11] sm:$0xff]  ;;  %v242_v0 = vld [vmem:[#allocation5 + $0x108] sm:$0xff]  ;;  %v489_v29 = vld [vmem:[#allocation5 + $0x2f8] sm:$0xff] }
  0x44   : > { %330 = vmatpush.msra.mxu2 %v220_v41  ;;  %310 = vmatpush.msra.mxu1 %v251_v42  ;;  %v241_v63 = vld [vmem:[#allocation5 + $0x100] sm:$0xff]  ;;  %v207_v1 = vld [vmem:[%s1547_s11 + $0x8] sm:$0xff]  ;;  %v488_v27 = vld [vmem:[#allocation5 + $0x2f0] sm:$0xff]  ;;  %s1370_s11 = sshra.s32 %s1124_s10, 4  ;;  %s1371_s11 = int_to_ptr.hbm [resolvable:$true] %s1370_s11 }
  0x45   : > { %350 = vmatpush.msra.mxu3 %v252_v43  ;;  %291 = vmatpush.msra.mxu0 %v217_v44  ;;  %v1562_v2 = vld [vmem:[%s1754_s2] sm:$0x77]  ;;  %v520_v28 = vld [vmem:[#allocation5 + $0x3f0] sm:$0xff]  ;;  %v521_v30 = vld [vmem:[#allocation5 + $0x3f8] sm:$0xff]  ;;  %s1372_s20 = scalar_lea.hbm %s1371_s11, 16  ;;  %p1377_p5 = scmp.lt.s32.totalorder %s1371_s11, %s1755_s3 }
  0x46   : > { %331 = vmatpush.msra.mxu2 %v218_v45  ;;  %311 = vmatpush.msra.mxu1 %v249_v46  ;;  %v274_v3 = vperm.slane %v1562_v2, 0  ;;  %v275_v5 = vperm.slane %v1562_v2, 4  ;;  %v486_v31 = vld [vmem:[#allocation5 + $0x2e0] sm:$0xff]  ;;  %v487_v37 = vld [vmem:[#allocation5 + $0x2e8] sm:$0xff]  ;;  %v484_v39 = vld [vmem:[#allocation5 + $0x2d0] sm:$0xff]  ;;  %p1373_p1 = scmp.ne.s32.totalorder %s1371_s11, %s1372_s20  ;;  %p1378_p6 = scmp.lt.s32.totalorder %s1376_s16, %s1372_s20 }
  0x47   : > { %351 = vmatpush.msra.mxu3 %v250_v47  ;;  %292 = vmatpush.msra.mxu0 %v215_v48  ;;  %v518_v32 = vld [vmem:[#allocation5 + $0x3e0] sm:$0xff]  ;;  %v519_v38 = vld [vmem:[#allocation5 + $0x3e8] sm:$0xff]  ;;  %v516_v40 = vld [vmem:[#allocation5 + $0x3d0] sm:$0xff] }
  0x48   : > { %332 = vmatpush.msra.mxu2 %v216_v49  ;;  %312 = vmatpush.msra.mxu1 %v247_v50  ;;  %v278_v4 = vperm.slane %v274_v3, 0  ;;  %v279_v10 = vperm.slane %v275_v5, 0  ;;  %v485_v41 = vld [vmem:[#allocation5 + $0x2d8] sm:$0xff]  ;;  %v482_v47 = vld [vmem:[#allocation5 + $0x2c0] sm:$0xff]  ;;  %v483_v49 = vld [vmem:[#allocation5 + $0x2c8] sm:$0xff]  ;;  %p1374_p3 = pnand %p1373_p1, %p1510_p12  ;;  %p1379_p7 = por %p1378_p6, %p1377_p5 }
  0x49   : > { %352 = vmatpush.msra.mxu3 %v248_v51  ;;  %293 = vmatpush.msra.mxu0 %v213_v52  ;;  %v517_v42 = vld [vmem:[#allocation5 + $0x3d8] sm:$0xff]  ;;  %v514_v48 = vld [vmem:[#allocation5 + $0x3c0] sm:$0xff]  ;;  %v515_v50 = vld [vmem:[#allocation5 + $0x3c8] sm:$0xff] }
  0x4a   : > { %333 = vmatpush.msra.mxu2 %v214_v53  ;;  %313 = vmatpush.msra.mxu1 %v245_v54  ;;  %v511_v3 = vld [vmem:[#allocation5 + $0x3a8] sm:$0xff]  ;;  %p1375_p11 = pneg %p1374_p3 }
  0x4b   : > { %353 = vmatpush.msra.mxu3 %v246_v55  ;;  %294 = vmatpush.msra.mxu0 %v211_v56  ;;  %v480_v55 = vld [vmem:[#allocation5 + $0x2b0] sm:$0xff] }
  0x4c   : > { %334 = vmatpush.msra.mxu2 %v212_v57  ;;  %314 = vmatpush.msra.mxu1 %v243_v58  ;;  %v512_v56 = vld [vmem:[#allocation5 + $0x3b0] sm:$0xff]  ;;  %v481_v57 = vld [vmem:[#allocation5 + $0x2b8] sm:$0xff]  ;;  %p1380_p8 = pnand %p1379_p7, %p1375_p11 }
  0x4d   : > { %354 = vmatpush.msra.mxu3 %v244_v59  ;;  %295 = vmatpush.msra.mxu0 %v209_v60  ;;  %v513_v58 = vld [vmem:[#allocation5 + $0x3b8] sm:$0xff] }
  0x4e   : > { %335 = vmatpush.msra.mxu2 %v210_v61  ;;  %296 = vmatmul.f32.vlgmr.msra.gmra.mxu0 %v206_v62 }
  0x4f   : > { %336 = vmatmul.f32.vlgmr.msra.gmra.mxu2 %v206_v62  ;;  %315 = vmatpush.msra.mxu1 %v241_v63  ;;  %v478_v63 = vld [vmem:[#allocation5 + $0x2a0] sm:$0xff] }
  0x50   : > { %355 = vmatpush.msra.mxu3 %v242_v0  ;;  %316 = vmatmul.f32.vlgmr.msra.gmra.mxu1 %v207_v1  ;;  %v510_v0 = vld [vmem:[#allocation5 + $0x3a0] sm:$0xff] }
  0x51   : > { %356 = vmatmul.f32.vlgmr.msra.gmra.mxu3 %v207_v1  ;;  %529 = vmatpush.msrb.mxu0 %v488_v27  ;;  %v479_v1 = vld [vmem:[#allocation5 + $0x2a8] sm:$0xff] }
  0x52   : > { %549 = vmatpush.msrb.mxu1 %v520_v28  ;;  %569 = vmatpush.msrb.mxu2 %v489_v29  ;;  %v470_v28 = vld [vmem:[#allocation5 + $0x260] sm:$0xff] }
  0x53   : > { %589 = vmatpush.msrb.mxu3 %v521_v30  ;;  %530 = vmatpush.msrb.mxu0 %v486_v31  ;;  %v502_v29 = vld [vmem:[#allocation5 + $0x360] sm:$0xff]  ;;  %v471_v30 = vld [vmem:[#allocation5 + $0x268] sm:$0xff] }
  0x54   : > { %550 = vmatpush.msrb.mxu1 %v518_v32  ;;  %570 = vmatpush.msrb.mxu2 %v487_v37  ;;  %v503_v31 = vld [vmem:[#allocation5 + $0x368] sm:$0xff] }
  0x55   : > { %590 = vmatpush.msrb.mxu3 %v519_v38  ;;  %531 = vmatpush.msrb.mxu0 %v484_v39  ;;  %v466_v38 = vld [vmem:[#allocation5 + $0x240] sm:$0xff] }
  0x56   : > { %551 = vmatpush.msrb.mxu1 %v516_v40  ;;  %571 = vmatpush.msrb.mxu2 %v485_v41  ;;  %v498_v39 = vld [vmem:[#allocation5 + $0x340] sm:$0xff]  ;;  %v467_v40 = vld [vmem:[#allocation5 + $0x248] sm:$0xff] }
  0x57   : > { %591 = vmatpush.msrb.mxu3 %v517_v42  ;;  %532 = vmatpush.msrb.mxu0 %v482_v47  ;;  %v499_v41 = vld [vmem:[#allocation5 + $0x348] sm:$0xff]  ;;  %v497_v47 = vld [vmem:[#allocation5 + $0x338] sm:$0xff] }
  0x58   : > { %552 = vmatpush.msrb.mxu1 %v514_v48  ;;  %572 = vmatpush.msrb.mxu2 %v483_v49  ;;  %v462_v48 = vld [vmem:[#allocation5 + $0x220] sm:$0xff] }
  0x59   : > { %592 = vmatpush.msrb.mxu3 %v515_v50  ;;  %533 = vmatpush.msrb.mxu0 %v480_v55  ;;  %v494_v49 = vld [vmem:[#allocation5 + $0x320] sm:$0xff]  ;;  %v463_v50 = vld [vmem:[#allocation5 + $0x228] sm:$0xff]  ;;  %v492_v55 = vld [vmem:[#allocation5 + $0x310] sm:$0xff] }
  0x5a   : > { %553 = vmatpush.msrb.mxu1 %v512_v56  ;;  %573 = vmatpush.msrb.mxu2 %v481_v57  ;;  %v461_v56 = vld [vmem:[#allocation5 + $0x218] sm:$0xff] }
  0x5b   : > { %593 = vmatpush.msrb.mxu3 %v513_v58  ;;  %534 = vmatpush.msrb.mxu0 %v478_v63  ;;  %v493_v57 = vld [vmem:[#allocation5 + $0x318] sm:$0xff]  ;;  %v491_v63 = vld [vmem:[#allocation5 + $0x308] sm:$0xff] }
  0x5c   : > { %554 = vmatpush.msrb.mxu1 %v510_v0  ;;  %574 = vmatpush.msrb.mxu2 %v479_v1 }
  0x5d   : > { %594 = vmatpush.msrb.mxu3 %v511_v3 }
  0xcb   : > { %v297_v6 = vpop.f32.mrf.mxu0 }
  0xcc   : > { %v298_v7 = vadd.f32 %v297_v6, %v278_v4 }
  0xcd   : > { %v317_v8 = vpop.f32.mrf.mxu1 }
  0xce   : > { %v318_v9 = vadd.f32 %v317_v8, %v298_v7  ;;  %v476_v7 = vld [vmem:[#allocation5 + $0x290] sm:$0xff] }
  0xcf   : > { %v508_v8 = vld [vmem:[#allocation5 + $0x390] sm:$0xff]  ;;  %535 = vmatpush.msrb.mxu0 %v476_v7 }
  0xd0   : > { %v1566_v11 = vmax.f32 %v318_v9, 0.0  ;;  %v477_v9 = vld [vmem:[#allocation5 + $0x298] sm:$0xff]  ;;  %555 = vmatpush.msrb.mxu1 %v508_v8 }
  0xd1   : > { %575 = vmatpush.msrb.mxu2 %v477_v9 }
  0xd2   : > { %v337_v12 = vpop.f32.mrf.mxu2  ;;  %v362_v13 = vrot.slane %v1566_v11, 4  ;;  %v374_v14 = vmul.f32 %v1566_v11, %v1566_v11 }
  0xd3   : > { %v338_v15 = vadd.f32 %v337_v12, %v279_v10  ;;  %v509_v10 = vld [vmem:[#allocation5 + $0x398] sm:$0xff] }
  0xd4   : > { %v357_v16 = vpop.f32.mrf.mxu3  ;;  %v363_v17 = vadd.f32 %v362_v13, %v1566_v11  ;;  %v376_v18 = vrot.slane %v374_v14, 4  ;;  %595 = vmatpush.msrb.mxu3 %v509_v10 }
  0xd5   : > { %v358_v19 = vadd.f32 %v357_v16, %v338_v15  ;;  %v474_v15 = vld [vmem:[#allocation5 + $0x280] sm:$0xff] }
  0xd6   : > { %v364_v20 = vrot.slane %v363_v17, 2  ;;  %v377_v21 = vadd.f32 %v376_v18, %v374_v14  ;;  %v506_v16 = vld [vmem:[#allocation5 + $0x380] sm:$0xff]  ;;  %v507_v18 = vld [vmem:[#allocation5 + $0x388] sm:$0xff]  ;;  %536 = vmatpush.msrb.mxu0 %v474_v15 }
  0xd7   : > { %v1572_v22 = vmax.f32 %v358_v19, 0.0  ;;  %556 = vmatpush.msrb.mxu1 %v506_v16  ;;  %596 = vmatpush.msrb.mxu3 %v507_v18 }
  0xd8   : > { %v365_v23 = vadd.f32 %v364_v20, %v363_v17  ;;  %v378_v24 = vrot.slane %v377_v21, 2  ;;  %v475_v17 = vld [vmem:[#allocation5 + $0x288] sm:$0xff] }
  0xd9   : > { %v368_v25 = vrot.slane %v1572_v22, 4  ;;  %v375_v26 = vmul.f32 %v1572_v22, %v1572_v22  ;;  %576 = vmatpush.msrb.mxu2 %v475_v17 }
  0xda   : > { %v366_v33 = vrot.slane %v365_v23, 1  ;;  %v379_v34 = vadd.f32 %v378_v24, %v377_v21  ;;  %v504_v24 = vld [vmem:[#allocation5 + $0x370] sm:$0xff] }
  0xdb   : > { %v369_v35 = vadd.f32 %v368_v25, %v1572_v22  ;;  %v382_v36 = vrot.slane %v375_v26, 4  ;;  %v473_v25 = vld [vmem:[#allocation5 + $0x278] sm:$0xff]  ;;  %557 = vmatpush.msrb.mxu1 %v504_v24 }
  0xdc   : > { %v367_v43 = vadd.f32 %v366_v33, %v365_v23  ;;  %v380_v44 = vrot.slane %v379_v34, 1  ;;  %v472_v23 = vld [vmem:[#allocation5 + $0x270] sm:$0xff]  ;;  %577 = vmatpush.msrb.mxu2 %v473_v25 }
  0xdd   : > { %v370_v45 = vrot.slane %v369_v35, 2  ;;  %v383_v46 = vadd.f32 %v382_v36, %v375_v26  ;;  %v505_v26 = vld [vmem:[#allocation5 + $0x378] sm:$0xff]  ;;  %537 = vmatpush.msrb.mxu0 %v472_v23  ;;  %v468_v33 = vld [vmem:[#allocation5 + $0x250] sm:$0xff]  ;;  %558 = vmatpush.msrb.mxu1 %v502_v29 }
  0xde   : > { %v381_v51 = vadd.f32 %v380_v44, %v379_v34  ;;  %v1578_v52 = vmul.f32 0.125, %v367_v43  ;;  %597 = vmatpush.msrb.mxu3 %v505_v26  ;;  %v500_v34 = vld [vmem:[#allocation5 + $0x350] sm:$0xff]  ;;  %v501_v36 = vld [vmem:[#allocation5 + $0x358] sm:$0xff]  ;;  %578 = vmatpush.msrb.mxu2 %v471_v30 }
  0xdf   : > { %v371_v53 = vadd.f32 %v370_v45, %v369_v35  ;;  %v384_v54 = vrot.slane %v383_v46, 2  ;;  %538 = vmatpush.msrb.mxu0 %v470_v28  ;;  %v469_v35 = vld [vmem:[#allocation5 + $0x258] sm:$0xff]  ;;  %559 = vmatpush.msrb.mxu1 %v500_v34  ;;  %v464_v43 = vld [vmem:[#allocation5 + $0x230] sm:$0xff] }
  0xe0   : > { %v390_v59 = vmul.f32 0.125, %v381_v51  ;;  %v392_v60 = vmul.f32 %v1578_v52, %v1578_v52  ;;  %598 = vmatpush.msrb.mxu3 %v503_v31  ;;  %579 = vmatpush.msrb.mxu2 %v469_v35  ;;  %v496_v44 = vld [vmem:[#allocation5 + $0x330] sm:$0xff]  ;;  %v495_v51 = vld [vmem:[#allocation5 + $0x328] sm:$0xff] }
  0xe1   : > { %v372_v61 = vrot.slane %v371_v53, 1  ;;  %v385_v62 = vadd.f32 %v384_v54, %v383_v46  ;;  %539 = vmatpush.msrb.mxu0 %v468_v33  ;;  %560 = vmatpush.msrb.mxu1 %v498_v39  ;;  %v465_v46 = vld [vmem:[#allocation5 + $0x238] sm:$0xff]  ;;  %v460_v54 = vld [vmem:[#allocation5 + $0x210] sm:$0xff] }
  0xe2   : > { %v394_v4 = vsub.f32 %v390_v59, %v392_v60  ;;  %599 = vmatpush.msrb.mxu3 %v501_v36  ;;  %580 = vmatpush.msrb.mxu2 %v467_v40  ;;  %v458_v59 = vld [vmem:[#allocation5 + $0x200] sm:$0xff] }
  0xe3   : > { %v373_v5 = vadd.f32 %v372_v61, %v371_v53  ;;  %v386_v6 = vrot.slane %v385_v62, 1  ;;  %540 = vmatpush.msrb.mxu0 %v466_v38  ;;  %561 = vmatpush.msrb.mxu1 %v496_v44  ;;  %v490_v60 = vld [vmem:[#allocation5 + $0x300] sm:$0xff] }
  0xe4   : > { %v396_v12 = vmax.f32 %v394_v4, 0.0  ;;  %600 = vmatpush.msrb.mxu3 %v499_v41  ;;  %581 = vmatpush.msrb.mxu2 %v465_v46 }
  0xe5   : > { %v387_v13 = vadd.f32 %v386_v6, %v385_v62  ;;  %v1582_v14 = vmul.f32 0.125, %v373_v5  ;;  %541 = vmatpush.msrb.mxu0 %v464_v43  ;;  %562 = vmatpush.msrb.mxu1 %v494_v49  ;;  %v459_v62 = vld [vmem:[#allocation5 + $0x208] sm:$0xff] }
  0xe6   : > { %v1584_v19 = vadd.f32 1e-05, %v396_v12  ;;  %601 = vmatpush.msrb.mxu3 %v497_v47  ;;  %582 = vmatpush.msrb.mxu2 %v463_v50 }
  0xe7   : > { %v391_v20 = vmul.f32 0.125, %v387_v13  ;;  %v393_v21 = vmul.f32 %v1582_v14, %v1582_v14  ;;  %542 = vmatpush.msrb.mxu0 %v462_v48  ;;  %563 = vmatpush.msrb.mxu1 %v492_v55 }
  0xe8   : > { %1284 = vrsqrt.f32 %v1584_v19  ;;  %602 = vmatpush.msrb.mxu3 %v495_v51  ;;  %583 = vmatpush.msrb.mxu2 %v461_v56  ;;  %vm406_vm4 = vweird.f32 %v1584_v19  ;;  %v736_v56 = vld [vmem:[#allocation5 + $0x4f0] sm:$0xff] }
  0xe9   : > { %v395_v27 = vsub.f32 %v391_v20, %v393_v21  ;;  %543 = vmatpush.msrb.mxu0 %v460_v54  ;;  %564 = vmatpush.msrb.mxu1 %v490_v60 }
  0xea   : > { %603 = vmatpush.msrb.mxu3 %v493_v57  ;;  %584 = vmatpush.msrb.mxu2 %v459_v62  ;;  %v768_v57 = vld [vmem:[#allocation5 + $0x5f0] sm:$0xff] }
  0xeb   : > { %v397_v32 = vmax.f32 %v395_v27, 0.0  ;;  %544 = vmatpush.msrb.mxu0 %v458_v59  ;;  %797 = vmatpush.msra.mxu1 %v768_v57 }
  0xec   : > { %604 = vmatpush.msrb.mxu3 %v491_v63 }
  0xed   : > { %v1589_v37 = vadd.f32 1e-05, %v397_v32  ;;  %777 = vmatpush.msra.mxu0 %v736_v56  ;;  %v753_v56 = vld [vmem:[#allocation5 + $0x578] sm:$0xff] }
  0xee   : > { %v1591_v42 = vpop.eup %1284 }
  0xef   : > { %1286 = vrsqrt.f32 %v1589_v37  ;;  %v401_v45 = vmul.f32 %v1591_v42, %v1584_v19  ;;  %vm407_vm1 = vweird.f32 %v1591_v42  ;;  %vm416_vm2 = vweird.f32 %v1589_v37 }
  0xf0   : > { %vm408_vm6 = vmor %vm406_vm4, %vm407_vm1 }
  0xf1   : > { %v402_v53 = vmul.f32 %v1591_v42, %v401_v45 }
  0xf3   : > { %v403_v0 = vmul.f32 0.5, %v402_v53 }
  0xf5   : > { %v1287_v58 = vpop.eup %1286  ;;  %v404_v4 = vsub.f32 1.5, %v403_v0  ;;  %v734_v0 = vld [vmem:[#allocation5 + $0x4e0] sm:$0xff] }
  0xf6   : > { %v411_v61 = vmul.f32 %v1287_v58, %v1589_v37  ;;  %vm417_vm0 = vweird.f32 %v1287_v58  ;;  %778 = vmatpush.msra.mxu0 %v734_v0 }
  0xf7   : > { %v405_v6 = vmul.f32 %v1591_v42, %v404_v4  ;;  %vm418_vm3 = vmor %vm416_vm2, %vm417_vm0 }
  0xf8   : > { %v412_v1 = vmul.f32 %v1287_v58, %v411_v61  ;;  %v769_v61 = vld [vmem:[#allocation5 + $0x5f8] sm:$0xff] }
  0xf9   : > { %v409_v10 = vsel %vm408_vm6, %v1591_v42, %v405_v6  ;;  %837 = vmatpush.msra.mxu3 %v769_v61  ;;  %v767_v6 = vld [vmem:[#allocation5 + $0x5e8] sm:$0xff] }
  0xfa   : > { %v413_v3 = vmul.f32 0.5, %v412_v1  ;;  %v766_v1 = vld [vmem:[#allocation5 + $0x5e0] sm:$0xff]  ;;  %v751_v61 = vld [vmem:[#allocation5 + $0x568] sm:$0xff] }
  0xfb   : > { %798 = vmatpush.msra.mxu1 %v766_v1  ;;  %838 = vmatpush.msra.mxu3 %v767_v6  ;;  %v717_v1 = vld [vmem:[#allocation5 + $0x458] sm:$0xff]  ;;  %v746_v6 = vld [vmem:[#allocation5 + $0x540] sm:$0xff] }
  0xfc   : > { %v414_v5 = vsub.f32 1.5, %v413_v3  ;;  %v735_v3 = vld [vmem:[#allocation5 + $0x4e8] sm:$0xff] }
  0xfe   : > { %v415_v7 = vmul.f32 %v1287_v58, %v414_v5 }
 0x100   : > { %v419_v8 = vsel %vm418_vm3, %v1287_v58, %v415_v7  ;;  %v737_v58 = vld [vmem:[#allocation5 + $0x4f8] sm:$0xff] }
 0x101   : > { %v422_v9 = vrot.slane %v419_v8, 4  ;;  %817 = vmatpush.msra.mxu2 %v737_v58  ;;  %v718_v58 = vld [vmem:[#allocation5 + $0x460] sm:$0xff] }
 0x103   : > { %v424_v12 = vsel %vm423_vm5, %v409_v10, %v422_v9  ;;  %818 = vmatpush.msra.mxu2 %v735_v3  ;;  %v732_v9 = vld [vmem:[#allocation5 + $0x4d0] sm:$0xff]  ;;  %v749_v3 = vld [vmem:[#allocation5 + $0x558] sm:$0xff] }
 0x104   : > { %v425_v13 = vrot.slane %v424_v12, 7  ;;  %v764_v10 = vld [vmem:[#allocation5 + $0x5d0] sm:$0xff]  ;;  %v733_v12 = vld [vmem:[#allocation5 + $0x4d8] sm:$0xff]  ;;  %779 = vmatpush.msra.mxu0 %v732_v9 }
 0x105   : > { %799 = vmatpush.msra.mxu1 %v764_v10  ;;  %819 = vmatpush.msra.mxu2 %v733_v12  ;;  %v712_v10 = vld [vmem:[#allocation5 + $0x430] sm:$0xff] }
 0x106   : > { %v427_v15 = vmul.f32 %v425_v13, %v1562_v2  ;;  %v744_v12 = vld [vmem:[#allocation5 + $0x530] sm:$0xff] }
 0x108   : > { %v429_v16 = vperm.slane %v427_v15, 1  ;;  %v430_v17 = vperm.slane %v427_v15, 5 }
 0x10a   : > { %v434_v18 = vmul.f32 %v430_v17, %v1582_v14  ;;  %v433_v20 = vmul.f32 %v429_v16, %v1578_v52  ;;  %v442_v25 = vperm.slane %v429_v16, 1  ;;  %v443_v26 = vperm.slane %v430_v17, 1  ;;  %v765_v16 = vld [vmem:[#allocation5 + $0x5d8] sm:$0xff] }
 0x10b   : > { %839 = vmatpush.msra.mxu3 %v765_v16  ;;  %v745_v16 = vld [vmem:[#allocation5 + $0x538] sm:$0xff] }
 0x10c   : > { %v437_v21 = vrot.slane %v434_v18, 4  ;;  %v444_v29 = vmul.f32 %v442_v25, %v1566_v11  ;;  %v445_v31 = vmul.f32 %v443_v26, %v1572_v22  ;;  %v763_v25 = vld [vmem:[#allocation5 + $0x5c8] sm:$0xff] }
 0x10d   : > { %840 = vmatpush.msra.mxu3 %v763_v25  ;;  %v709_v25 = vld [vmem:[#allocation5 + $0x418] sm:$0xff] }
 0x10e   : > { %v438_v19 = vsel %vm423_vm5, %v433_v20, %v437_v21  ;;  %v730_v20 = vld [vmem:[#allocation5 + $0x4c0] sm:$0xff] }
 0x10f   : > { %v439_v23 = vrot.slane %v438_v19, 6  ;;  %v762_v21 = vld [vmem:[#allocation5 + $0x5c0] sm:$0xff]  ;;  %v731_v19 = vld [vmem:[#allocation5 + $0x4c8] sm:$0xff]  ;;  %780 = vmatpush.msra.mxu0 %v730_v20 }
 0x110   : > { %800 = vmatpush.msra.mxu1 %v762_v21  ;;  %820 = vmatpush.msra.mxu2 %v731_v19  ;;  %v711_v21 = vld [vmem:[#allocation5 + $0x428] sm:$0xff] }
 0x111   : > { %v441_v24 = vsub.f32 %v1562_v2, %v439_v23  ;;  %v1614_v2 = vld [vmem:[%s1754_s2 + $0x8] sm:$0x77] }
 0x112   : > { %v523_v52 = vperm.slane %v1614_v2, 0  ;;  %v524_v11 = vperm.slane %v1614_v2, 4  ;;  %v743_v19 = vld [vmem:[#allocation5 + $0x528] sm:$0xff] }
 0x113   : > { %v447_v27 = vperm.slane %v441_v24, 2  ;;  %v448_v28 = vperm.slane %v441_v24, 6 }
 0x114   : > { %v527_v34 = vperm.slane %v523_v52, 0  ;;  %v528_v38 = vperm.slane %v524_v11, 0  ;;  %v726_v52 = vld [vmem:[#allocation5 + $0x4a0] sm:$0xff] }
 0x115   : > { %v451_v30 = vperm.slane %v447_v27, 2  ;;  %v452_v32 = vperm.slane %v448_v28, 2  ;;  %v728_v28 = vld [vmem:[#allocation5 + $0x4b0] sm:$0xff] }
 0x116   : > { %781 = vmatpush.msra.mxu0 %v728_v28  ;;  %v706_v28 = vld [vmem:[#allocation5 + $0x400] sm:$0xff] }
 0x117   : > { %v453_v33 = vadd.f32 %v451_v30, %v444_v29  ;;  %v454_v14 = vadd.f32 %v452_v32, %v445_v31  ;;  %v760_v29 = vld [vmem:[#allocation5 + $0x5b0] sm:$0xff]  ;;  %v729_v30 = vld [vmem:[#allocation5 + $0x4b8] sm:$0xff] }
 0x118   : > { %801 = vmatpush.msra.mxu1 %v760_v29  ;;  %v761_v32 = vld [vmem:[#allocation5 + $0x5b8] sm:$0xff]  ;;  %821 = vmatpush.msra.mxu2 %v729_v30  ;;  %v738_v29 = vld [vmem:[#allocation5 + $0x500] sm:$0xff] }
 0x119   : > { %545 = vmatmul.f32.vlgmr.msrb.gmra.mxu0 %v453_v33  ;;  %565 = vmatmul.f32.vlgmr.msrb.gmra.mxu1 %v454_v14 }
 0x11a   : > { %585 = vmatmul.f32.vlgmr.msrb.gmra.mxu2 %v453_v33  ;;  %605 = vmatmul.f32.vlgmr.msrb.gmra.mxu3 %v454_v14 }
 0x11b   : > { %841 = vmatpush.msra.mxu3 %v761_v32  ;;  %782 = vmatpush.msra.mxu0 %v726_v52  ;;  %v707_v32 = vld [vmem:[#allocation5 + $0x408] sm:$0xff] }
 0x196   : > { %v546_v35 = vpop.f32.mrf.mxu0  ;;  %v566_v22 = vpop.f32.mrf.mxu1 }
 0x197   : > { %v547_v36 = vadd.f32 %v546_v35, %v527_v34  ;;  %v758_v34 = vld [vmem:[#allocation5 + $0x5a0] sm:$0xff]  ;;  %v727_v35 = vld [vmem:[#allocation5 + $0x4a8] sm:$0xff] }
 0x198   : > { %802 = vmatpush.msra.mxu1 %v758_v34  ;;  %822 = vmatpush.msra.mxu2 %v727_v35 }
 0x199   : > { %v567_v37 = vadd.f32 %v566_v22, %v547_v36  ;;  %v759_v36 = vld [vmem:[#allocation5 + $0x5a8] sm:$0xff] }
 0x19a   : > { %842 = vmatpush.msra.mxu3 %v759_v36 }
 0x19b   : > { %v1618_v39 = vmax.f32 %v567_v37, 0.0 }
 0x19d   : > { %v611_v40 = vrot.slane %v1618_v39, 4  ;;  %v623_v41 = vmul.f32 %v1618_v39, %v1618_v39  ;;  %v586_v42 = vpop.f32.mrf.mxu2  ;;  %v606_v46 = vpop.f32.mrf.mxu3 }
 0x19e   : > { %v587_v43 = vadd.f32 %v586_v42, %v528_v38  ;;  %v724_v38 = vld [vmem:[#allocation5 + $0x490] sm:$0xff] }
 0x19f   : > { %v612_v44 = vadd.f32 %v611_v40, %v1618_v39  ;;  %v625_v45 = vrot.slane %v623_v41, 4  ;;  %v756_v40 = vld [vmem:[#allocation5 + $0x590] sm:$0xff]  ;;  %783 = vmatpush.msra.mxu0 %v724_v38 }
 0x1a0   : > { %v607_v47 = vadd.f32 %v606_v46, %v587_v43  ;;  %803 = vmatpush.msra.mxu1 %v756_v40  ;;  %v757_v43 = vld [vmem:[#allocation5 + $0x598] sm:$0xff]  ;;  %v722_v46 = vld [vmem:[#allocation5 + $0x480] sm:$0xff] }
 0x1a1   : > { %v613_v48 = vrot.slane %v612_v44, 2  ;;  %v626_v49 = vadd.f32 %v625_v45, %v623_v41  ;;  %v725_v41 = vld [vmem:[#allocation5 + $0x498] sm:$0xff]  ;;  %843 = vmatpush.msra.mxu3 %v757_v43  ;;  %784 = vmatpush.msra.mxu0 %v722_v46 }
 0x1a2   : > { %v1624_v50 = vmax.f32 %v607_v47, 0.0  ;;  %823 = vmatpush.msra.mxu2 %v725_v41  ;;  %v754_v47 = vld [vmem:[#allocation5 + $0x580] sm:$0xff] }
 0x1a3   : > { %v614_v51 = vadd.f32 %v613_v48, %v612_v44  ;;  %v627_v53 = vrot.slane %v626_v49, 2  ;;  %v723_v48 = vld [vmem:[#allocation5 + $0x488] sm:$0xff]  ;;  %804 = vmatpush.msra.mxu1 %v754_v47 }
 0x1a4   : > { %v617_v54 = vrot.slane %v1624_v50, 4  ;;  %v624_v55 = vmul.f32 %v1624_v50, %v1624_v50  ;;  %824 = vmatpush.msra.mxu2 %v723_v48 }
 0x1a5   : > { %v615_v59 = vrot.slane %v614_v51, 1  ;;  %v628_v60 = vadd.f32 %v627_v53, %v626_v49  ;;  %v755_v49 = vld [vmem:[#allocation5 + $0x588] sm:$0xff]  ;;  %v720_v53 = vld [vmem:[#allocation5 + $0x470] sm:$0xff] }
 0x1a6   : > { %v618_v62 = vadd.f32 %v617_v54, %v1624_v50  ;;  %v631_v63 = vrot.slane %v624_v55, 4  ;;  %844 = vmatpush.msra.mxu3 %v755_v49  ;;  %v752_v54 = vld [vmem:[#allocation5 + $0x570] sm:$0xff]  ;;  %785 = vmatpush.msra.mxu0 %v720_v53 }
 0x1a7   : > { %v616_v4 = vadd.f32 %v615_v59, %v614_v51  ;;  %v629_v5 = vrot.slane %v628_v60, 1  ;;  %805 = vmatpush.msra.mxu1 %v752_v54  ;;  %v750_v59 = vld [vmem:[#allocation5 + $0x560] sm:$0xff] }
 0x1a8   : > { %v619_v7 = vrot.slane %v618_v62, 2  ;;  %v632_v8 = vadd.f32 %v631_v63, %v624_v55  ;;  %v721_v55 = vld [vmem:[#allocation5 + $0x478] sm:$0xff]  ;;  %845 = vmatpush.msra.mxu3 %v753_v56  ;;  %786 = vmatpush.msra.mxu0 %v718_v58  ;;  %v748_v63 = vld [vmem:[#allocation5 + $0x550] sm:$0xff] }
 0x1a9   : > { %v630_v13 = vadd.f32 %v629_v5, %v628_v60  ;;  %v1630_v15 = vmul.f32 0.125, %v616_v4  ;;  %825 = vmatpush.msra.mxu2 %v721_v55  ;;  %v719_v60 = vld [vmem:[#allocation5 + $0x468] sm:$0xff]  ;;  %806 = vmatpush.msra.mxu1 %v750_v59  ;;  %v714_v4 = vld [vmem:[#allocation5 + $0x440] sm:$0xff] }
 0x1aa   : > { %v620_v17 = vadd.f32 %v619_v7, %v618_v62  ;;  %v633_v18 = vrot.slane %v632_v8, 2  ;;  %v716_v62 = vld [vmem:[#allocation5 + $0x450] sm:$0xff]  ;;  %846 = vmatpush.msra.mxu3 %v751_v61  ;;  %v715_v7 = vld [vmem:[#allocation5 + $0x448] sm:$0xff] }
 0x1ab   : > { %v639_v23 = vmul.f32 0.125, %v630_v13  ;;  %v641_v24 = vmul.f32 %v1630_v15, %v1630_v15  ;;  %826 = vmatpush.msra.mxu2 %v719_v60  ;;  %787 = vmatpush.msra.mxu0 %v716_v62  ;;  %v713_v13 = vld [vmem:[#allocation5 + $0x438] sm:$0xff] }
 0x1ac   : > { %v621_v26 = vrot.slane %v620_v17, 1  ;;  %v634_v27 = vadd.f32 %v633_v18, %v632_v8  ;;  %807 = vmatpush.msra.mxu1 %v748_v63  ;;  %v747_v8 = vld [vmem:[#allocation5 + $0x548] sm:$0xff]  ;;  %847 = vmatpush.msra.mxu3 %v749_v3  ;;  %v742_v18 = vld [vmem:[#allocation5 + $0x520] sm:$0xff] }
 0x1ad   : > { %v643_v31 = vsub.f32 %v639_v23, %v641_v24  ;;  %827 = vmatpush.msra.mxu2 %v717_v1  ;;  %788 = vmatpush.msra.mxu0 %v714_v4  ;;  %v708_v23 = vld [vmem:[#allocation5 + $0x410] sm:$0xff] }
 0x1ae   : > { %v622_v33 = vadd.f32 %v621_v26, %v620_v17  ;;  %v635_v14 = vrot.slane %v634_v27, 1  ;;  %808 = vmatpush.msra.mxu1 %v746_v6  ;;  %848 = vmatpush.msra.mxu3 %v747_v8  ;;  %v710_v17 = vld [vmem:[#allocation5 + $0x420] sm:$0xff]  ;;  %v740_v24 = vld [vmem:[#allocation5 + $0x510] sm:$0xff]  ;;  %v741_v26 = vld [vmem:[#allocation5 + $0x518] sm:$0xff] }
 0x1af   : > { %v645_v11 = vmax.f32 %v643_v31, 0.0  ;;  %828 = vmatpush.msra.mxu2 %v715_v7  ;;  %789 = vmatpush.msra.mxu0 %v712_v10 }
 0x1b0   : > { %v636_v22 = vadd.f32 %v635_v14, %v634_v27  ;;  %v1634_v37 = vmul.f32 0.125, %v622_v33  ;;  %809 = vmatpush.msra.mxu1 %v744_v12  ;;  %849 = vmatpush.msra.mxu3 %v745_v16  ;;  %v739_v33 = vld [vmem:[#allocation5 + $0x508] sm:$0xff] }
 0x1b1   : > { %v1636_v42 = vadd.f32 1e-05, %v645_v11  ;;  %829 = vmatpush.msra.mxu2 %v713_v13  ;;  %790 = vmatpush.msra.mxu0 %v710_v17 }
 0x1b2   : > { %v640_v44 = vmul.f32 0.125, %v636_v22  ;;  %v642_v45 = vmul.f32 %v1634_v37, %v1634_v37  ;;  %810 = vmatpush.msra.mxu1 %v742_v18  ;;  %850 = vmatpush.msra.mxu3 %v743_v19 }
 0x1b3   : > { %1288 = vrsqrt.f32 %v1636_v42  ;;  %830 = vmatpush.msra.mxu2 %v711_v21  ;;  %791 = vmatpush.msra.mxu0 %v708_v23  ;;  %vm655_vm11 = vweird.f32 %v1636_v42 }
 0x1b4   : > { %v644_v51 = vsub.f32 %v640_v44, %v642_v45  ;;  %811 = vmatpush.msra.mxu1 %v740_v24  ;;  %851 = vmatpush.msra.mxu3 %v741_v26  ;;  %v1016_v26 = vld [vmem:[#allocation5 + $0x7f0] sm:$0xff] }
 0x1b5   : > { %831 = vmatpush.msra.mxu2 %v709_v25  ;;  %792 = vmatpush.msra.mxu0 %v706_v28  ;;  %v984_v25 = vld [vmem:[#allocation5 + $0x6f0] sm:$0xff] }
 0x1b6   : > { %v646_v57 = vmax.f32 %v644_v51, 0.0  ;;  %812 = vmatpush.msra.mxu1 %v738_v29  ;;  %852 = vmatpush.msra.mxu3 %v739_v33  ;;  %v982_v33 = vld [vmem:[#allocation5 + $0x6e0] sm:$0xff] }
 0x1b7   : > { %832 = vmatpush.msra.mxu2 %v707_v32  ;;  %1025 = vmatpush.msrb.mxu0 %v984_v25  ;;  %v1001_v25 = vld [vmem:[#allocation5 + $0x778] sm:$0xff] }
 0x1b8   : > { %v1641_v0 = vadd.f32 1e-05, %v646_v57  ;;  %1045 = vmatpush.msrb.mxu1 %v1016_v26 }
 0x1b9   : > { %v1643_v5 = vpop.eup %1288  ;;  %1026 = vmatpush.msrb.mxu0 %v982_v33 }
 0x1ba   : > { %v650_v9 = vmul.f32 %v1643_v5, %v1636_v42  ;;  %1290 = vrsqrt.f32 %v1641_v0  ;;  %vm656_vm8 = vweird.f32 %v1643_v5  ;;  %vm665_vm9 = vweird.f32 %v1641_v0 }
 0x1bb   : > { %vm657_vm12 = vmor %vm655_vm11, %vm656_vm8 }
 0x1bc   : > { %v651_v20 = vmul.f32 %v1643_v5, %v650_v9 }
 0x1be   : > { %v652_v30 = vmul.f32 0.5, %v651_v20 }
 0x1c0   : > { %v1291_v27 = vpop.eup %1290  ;;  %v653_v52 = vsub.f32 1.5, %v652_v30  ;;  %v1017_v30 = vld [vmem:[#allocation5 + $0x7f8] sm:$0xff] }
 0x1c1   : > { %v660_v31 = vmul.f32 %v1291_v27, %v1641_v0  ;;  %vm666_vm7 = vweird.f32 %v1291_v27  ;;  %1085 = vmatpush.msrb.mxu3 %v1017_v30  ;;  %v999_v30 = vld [vmem:[#allocation5 + $0x768] sm:$0xff] }
 0x1c2   : > { %v654_v11 = vmul.f32 %v1643_v5, %v653_v52  ;;  %vm667_vm10 = vmor %vm665_vm9, %vm666_vm7  ;;  %v983_v52 = vld [vmem:[#allocation5 + $0x6e8] sm:$0xff] }
 0x1c3   : > { %v661_v14 = vmul.f32 %v1291_v27, %v660_v31 }
 0x1c4   : > { %v658_v40 = vsel %vm657_vm12, %v1643_v5, %v654_v11  ;;  %v1015_v11 = vld [vmem:[#allocation5 + $0x7e8] sm:$0xff] }
 0x1c5   : > { %v662_v34 = vmul.f32 0.5, %v661_v14  ;;  %v1014_v14 = vld [vmem:[#allocation5 + $0x7e0] sm:$0xff]  ;;  %1086 = vmatpush.msrb.mxu3 %v1015_v11 }
 0x1c6   : > { %1046 = vmatpush.msrb.mxu1 %v1014_v14  ;;  %v965_v14 = vld [vmem:[#allocation5 + $0x658] sm:$0xff]  ;;  %v994_v11 = vld [vmem:[#allocation5 + $0x740] sm:$0xff] }
 0x1c7   : > { %v663_v35 = vsub.f32 1.5, %v662_v34 }
 0x1c9   : > { %v664_v36 = vmul.f32 %v1291_v27, %v663_v35 }
 0x1cb   : > { %v668_v22 = vsel %vm667_vm10, %v1291_v27, %v664_v36  ;;  %v985_v27 = vld [vmem:[#allocation5 + $0x6f8] sm:$0xff] }
 0x1cc   : > { %v671_v38 = vrot.slane %v668_v22, 4  ;;  %1065 = vmatpush.msrb.mxu2 %v985_v27  ;;  %v966_v27 = vld [vmem:[#allocation5 + $0x660] sm:$0xff] }
 0x1ce   : > { %v672_v41 = vsel %vm423_vm5, %v658_v40, %v671_v38  ;;  %1066 = vmatpush.msrb.mxu2 %v983_v52  ;;  %v980_v38 = vld [vmem:[#allocation5 + $0x6d0] sm:$0xff]  ;;  %v997_v52 = vld [vmem:[#allocation5 + $0x758] sm:$0xff] }
 0x1cf   : > { %v673_v43 = vrot.slane %v672_v41, 7  ;;  %v1012_v40 = vld [vmem:[#allocation5 + $0x7d0] sm:$0xff]  ;;  %v981_v41 = vld [vmem:[#allocation5 + $0x6d8] sm:$0xff]  ;;  %1027 = vmatpush.msrb.mxu0 %v980_v38 }
 0x1d0   : > { %1047 = vmatpush.msrb.mxu1 %v1012_v40  ;;  %1067 = vmatpush.msrb.mxu2 %v981_v41  ;;  %v960_v40 = vld [vmem:[#allocation5 + $0x630] sm:$0xff] }
 0x1d1   : > { %v675_v44 = vmul.f32 %v1614_v2, %v673_v43  ;;  %v992_v41 = vld [vmem:[#allocation5 + $0x730] sm:$0xff] }
 0x1d3   : > { %v678_v45 = vperm.slane %v675_v44, 5  ;;  %v677_v46 = vperm.slane %v675_v44, 1 }
 0x1d5   : > { %v682_v47 = vmul.f32 %v678_v45, %v1634_v37  ;;  %v681_v49 = vmul.f32 %v677_v46, %v1630_v15  ;;  %v691_v53 = vperm.slane %v678_v45, 1  ;;  %v690_v55 = vperm.slane %v677_v46, 1  ;;  %v1666_v15 = vld [vmem:[%s1754_s2 + $0x10] sm:$0x77]  ;;  %v1013_v45 = vld [vmem:[#allocation5 + $0x7d8] sm:$0xff] }
 0x1d6   : > { %1087 = vmatpush.msrb.mxu3 %v1013_v45  ;;  %v993_v45 = vld [vmem:[#allocation5 + $0x738] sm:$0xff] }
 0x1d7   : > { %v685_v48 = vrot.slane %v682_v47, 4  ;;  %v693_v58 = vmul.f32 %v691_v53, %v1624_v50  ;;  %v692_v59 = vmul.f32 %v690_v55, %v1618_v39  ;;  %v772_v50 = vperm.slane %v1666_v15, 4 }
 0x1d9   : > { %v686_v51 = vsel %vm423_vm5, %v681_v49, %v685_v48  ;;  %v776_v4 = vperm.slane %v772_v50, 0  ;;  %v978_v48 = vld [vmem:[#allocation5 + $0x6c0] sm:$0xff] }
 0x1da   : > { %v687_v42 = vrot.slane %v686_v51, 6  ;;  %v1010_v49 = vld [vmem:[#allocation5 + $0x7c0] sm:$0xff]  ;;  %v979_v51 = vld [vmem:[#allocation5 + $0x6c8] sm:$0xff]  ;;  %1028 = vmatpush.msrb.mxu0 %v978_v48 }
 0x1db   : > { %1048 = vmatpush.msrb.mxu1 %v1010_v49  ;;  %1068 = vmatpush.msrb.mxu2 %v979_v51  ;;  %v959_v49 = vld [vmem:[#allocation5 + $0x628] sm:$0xff] }
 0x1dc   : > { %v689_v54 = vsub.f32 %v1614_v2, %v687_v42  ;;  %v771_v2 = vperm.slane %v1666_v15, 0  ;;  %v991_v51 = vld [vmem:[#allocation5 + $0x728] sm:$0xff] }
 0x1de   : > { %v695_v56 = vperm.slane %v689_v54, 2  ;;  %v696_v57 = vperm.slane %v689_v54, 6  ;;  %v775_v63 = vperm.slane %v771_v2, 0  ;;  %v1011_v54 = vld [vmem:[#allocation5 + $0x7c8] sm:$0xff]  ;;  %v974_v2 = vld [vmem:[#allocation5 + $0x6a0] sm:$0xff] }
 0x1df   : > { %1088 = vmatpush.msrb.mxu3 %v1011_v54  ;;  %v957_v54 = vld [vmem:[#allocation5 + $0x618] sm:$0xff] }
 0x1e0   : > { %v699_v60 = vperm.slane %v695_v56, 2  ;;  %v700_v61 = vperm.slane %v696_v57, 2  ;;  %v976_v57 = vld [vmem:[#allocation5 + $0x6b0] sm:$0xff] }
 0x1e1   : > { %1029 = vmatpush.msrb.mxu0 %v976_v57  ;;  %v954_v57 = vld [vmem:[#allocation5 + $0x600] sm:$0xff] }
 0x1e2   : > { %v701_v62 = vadd.f32 %v699_v60, %v692_v59  ;;  %v702_v37 = vadd.f32 %v700_v61, %v693_v58  ;;  %v1008_v58 = vld [vmem:[#allocation5 + $0x7b0] sm:$0xff]  ;;  %v977_v59 = vld [vmem:[#allocation5 + $0x6b8] sm:$0xff] }
 0x1e3   : > { %1049 = vmatpush.msrb.mxu1 %v1008_v58  ;;  %v1009_v61 = vld [vmem:[#allocation5 + $0x7b8] sm:$0xff]  ;;  %1069 = vmatpush.msrb.mxu2 %v977_v59  ;;  %v986_v58 = vld [vmem:[#allocation5 + $0x700] sm:$0xff] }
 0x1e4   : > { %793 = vmatmul.f32.vlgmr.msra.gmra.mxu0 %v701_v62  ;;  %813 = vmatmul.f32.vlgmr.msra.gmra.mxu1 %v702_v37 }
 0x1e5   : > { %833 = vmatmul.f32.vlgmr.msra.gmra.mxu2 %v701_v62  ;;  %853 = vmatmul.f32.vlgmr.msra.gmra.mxu3 %v702_v37 }
 0x1e6   : > { %1089 = vmatpush.msrb.mxu3 %v1009_v61  ;;  %1030 = vmatpush.msrb.mxu0 %v974_v2  ;;  %v955_v61 = vld [vmem:[#allocation5 + $0x608] sm:$0xff] }
 0x261   : > { %v794_v0 = vpop.f32.mrf.mxu0  ;;  %v814_v1 = vpop.f32.mrf.mxu1 }
 0x262   : > { %v795_v39 = vadd.f32 %v794_v0, %v775_v63  ;;  %v1006_v63 = vld [vmem:[#allocation5 + $0x7a0] sm:$0xff]  ;;  %v975_v0 = vld [vmem:[#allocation5 + $0x6a8] sm:$0xff] }
 0x263   : > { %1050 = vmatpush.msrb.mxu1 %v1006_v63  ;;  %1070 = vmatpush.msrb.mxu2 %v975_v0 }
 0x264   : > { %v815_v3 = vadd.f32 %v814_v1, %v795_v39  ;;  %v1007_v39 = vld [vmem:[#allocation5 + $0x7a8] sm:$0xff] }
 0x265   : > { %1090 = vmatpush.msrb.mxu3 %v1007_v39 }
 0x266   : > { %v1670_v5 = vmax.f32 %v815_v3, 0.0 }
 0x268   : > { %v859_v6 = vrot.slane %v1670_v5, 4  ;;  %v871_v7 = vmul.f32 %v1670_v5, %v1670_v5  ;;  %v834_v8 = vpop.f32.mrf.mxu2  ;;  %v854_v13 = vpop.f32.mrf.mxu3 }
 0x269   : > { %v835_v9 = vadd.f32 %v834_v8, %v776_v4  ;;  %v972_v4 = vld [vmem:[#allocation5 + $0x690] sm:$0xff] }
 0x26a   : > { %v860_v10 = vadd.f32 %v859_v6, %v1670_v5  ;;  %v873_v12 = vrot.slane %v871_v7, 4  ;;  %v1004_v6 = vld [vmem:[#allocation5 + $0x790] sm:$0xff]  ;;  %1031 = vmatpush.msrb.mxu0 %v972_v4 }
 0x26b   : > { %v855_v16 = vadd.f32 %v854_v13, %v835_v9  ;;  %1051 = vmatpush.msrb.mxu1 %v1004_v6  ;;  %v1005_v9 = vld [vmem:[#allocation5 + $0x798] sm:$0xff]  ;;  %v970_v13 = vld [vmem:[#allocation5 + $0x680] sm:$0xff] }
 0x26c   : > { %v861_v17 = vrot.slane %v860_v10, 2  ;;  %v874_v18 = vadd.f32 %v873_v12, %v871_v7  ;;  %v973_v7 = vld [vmem:[#allocation5 + $0x698] sm:$0xff]  ;;  %1091 = vmatpush.msrb.mxu3 %v1005_v9  ;;  %1032 = vmatpush.msrb.mxu0 %v970_v13 }
 0x26d   : > { %v1676_v20 = vmax.f32 %v855_v16, 0.0  ;;  %1071 = vmatpush.msrb.mxu2 %v973_v7  ;;  %v1002_v16 = vld [vmem:[#allocation5 + $0x780] sm:$0xff] }
 0x26e   : > { %v862_v21 = vadd.f32 %v861_v17, %v860_v10  ;;  %v875_v19 = vrot.slane %v874_v18, 2  ;;  %v971_v17 = vld [vmem:[#allocation5 + $0x688] sm:$0xff]  ;;  %1052 = vmatpush.msrb.mxu1 %v1002_v16 }
 0x26f   : > { %v865_v23 = vrot.slane %v1676_v20, 4  ;;  %v872_v24 = vmul.f32 %v1676_v20, %v1676_v20  ;;  %1072 = vmatpush.msrb.mxu2 %v971_v17 }
 0x270   : > { %v863_v28 = vrot.slane %v862_v21, 1  ;;  %v876_v29 = vadd.f32 %v875_v19, %v874_v18  ;;  %v1003_v18 = vld [vmem:[#allocation5 + $0x788] sm:$0xff]  ;;  %v968_v19 = vld [vmem:[#allocation5 + $0x670] sm:$0xff] }
 0x271   : > { %v866_v31 = vadd.f32 %v865_v23, %v1676_v20  ;;  %v879_v32 = vrot.slane %v872_v24, 4  ;;  %1092 = vmatpush.msrb.mxu3 %v1003_v18  ;;  %v1000_v23 = vld [vmem:[#allocation5 + $0x770] sm:$0xff]  ;;  %1033 = vmatpush.msrb.mxu0 %v968_v19 }
 0x272   : > { %v864_v34 = vadd.f32 %v863_v28, %v862_v21  ;;  %v877_v35 = vrot.slane %v876_v29, 1  ;;  %1053 = vmatpush.msrb.mxu1 %v1000_v23  ;;  %v998_v28 = vld [vmem:[#allocation5 + $0x760] sm:$0xff] }
 0x273   : > { %v867_v36 = vrot.slane %v866_v31, 2  ;;  %v880_v22 = vadd.f32 %v879_v32, %v872_v24  ;;  %v969_v24 = vld [vmem:[#allocation5 + $0x678] sm:$0xff]  ;;  %1093 = vmatpush.msrb.mxu3 %v1001_v25  ;;  %1034 = vmatpush.msrb.mxu0 %v966_v27  ;;  %v996_v32 = vld [vmem:[#allocation5 + $0x750] sm:$0xff] }
 0x274   : > { %v878_v43 = vadd.f32 %v877_v35, %v876_v29  ;;  %v1682_v44 = vmul.f32 0.125, %v864_v34  ;;  %1073 = vmatpush.msrb.mxu2 %v969_v24  ;;  %v967_v29 = vld [vmem:[#allocation5 + $0x668] sm:$0xff]  ;;  %1054 = vmatpush.msrb.mxu1 %v998_v28  ;;  %v962_v34 = vld [vmem:[#allocation5 + $0x640] sm:$0xff] }
 0x275   : > { %v868_v46 = vadd.f32 %v867_v36, %v866_v31  ;;  %v881_v47 = vrot.slane %v880_v22, 2  ;;  %v964_v31 = vld [vmem:[#allocation5 + $0x650] sm:$0xff]  ;;  %1094 = vmatpush.msrb.mxu3 %v999_v30  ;;  %v963_v36 = vld [vmem:[#allocation5 + $0x648] sm:$0xff] }
 0x276   : > { %v887_v42 = vmul.f32 0.125, %v878_v43  ;;  %v889_v53 = vmul.f32 %v1682_v44, %v1682_v44  ;;  %1074 = vmatpush.msrb.mxu2 %v967_v29  ;;  %1035 = vmatpush.msrb.mxu0 %v964_v31  ;;  %v961_v43 = vld [vmem:[#allocation5 + $0x638] sm:$0xff] }
 0x277   : > { %v869_v55 = vrot.slane %v868_v46, 1  ;;  %v882_v56 = vadd.f32 %v881_v47, %v880_v22  ;;  %1055 = vmatpush.msrb.mxu1 %v996_v32  ;;  %v995_v22 = vld [vmem:[#allocation5 + $0x748] sm:$0xff]  ;;  %1095 = vmatpush.msrb.mxu3 %v997_v52  ;;  %v990_v47 = vld [vmem:[#allocation5 + $0x720] sm:$0xff] }
 0x278   : > { %v891_v60 = vsub.f32 %v887_v42, %v889_v53  ;;  %1075 = vmatpush.msrb.mxu2 %v965_v14  ;;  %1036 = vmatpush.msrb.mxu0 %v962_v34  ;;  %v956_v42 = vld [vmem:[#allocation5 + $0x610] sm:$0xff] }
 0x279   : > { %v870_v62 = vadd.f32 %v869_v55, %v868_v46  ;;  %v883_v37 = vrot.slane %v882_v56, 1  ;;  %1056 = vmatpush.msrb.mxu1 %v994_v11  ;;  %1096 = vmatpush.msrb.mxu3 %v995_v22  ;;  %v958_v46 = vld [vmem:[#allocation5 + $0x620] sm:$0xff]  ;;  %v988_v53 = vld [vmem:[#allocation5 + $0x710] sm:$0xff]  ;;  %v989_v55 = vld [vmem:[#allocation5 + $0x718] sm:$0xff] }
 0x27a   : > { %v893_v50 = vmax.f32 %v891_v60, 0.0  ;;  %1076 = vmatpush.msrb.mxu2 %v963_v36  ;;  %1037 = vmatpush.msrb.mxu0 %v960_v40 }
 0x27b   : > { %v884_v1 = vadd.f32 %v883_v37, %v882_v56  ;;  %v1686_v3 = vmul.f32 0.125, %v870_v62  ;;  %1057 = vmatpush.msrb.mxu1 %v992_v41  ;;  %1097 = vmatpush.msrb.mxu3 %v993_v45  ;;  %v987_v62 = vld [vmem:[#allocation5 + $0x708] sm:$0xff] }
 0x27c   : > { %v1688_v8 = vadd.f32 1e-05, %v893_v50  ;;  %1077 = vmatpush.msrb.mxu2 %v961_v43  ;;  %1038 = vmatpush.msrb.mxu0 %v958_v46 }
 0x27d   : > { %v888_v10 = vmul.f32 0.125, %v884_v1  ;;  %v890_v12 = vmul.f32 %v1686_v3, %v1686_v3  ;;  %1058 = vmatpush.msrb.mxu1 %v990_v47  ;;  %1098 = vmatpush.msrb.mxu3 %v991_v51 }
 0x27e   : > { %1292 = vrsqrt.f32 %v1688_v8  ;;  %1078 = vmatpush.msrb.mxu2 %v959_v49  ;;  %1039 = vmatpush.msrb.mxu0 %v956_v42  ;;  %vm903_vm1 = vweird.f32 %v1688_v8 }
 0x27f   : > { %v892_v21 = vsub.f32 %v888_v10, %v890_v12  ;;  %1059 = vmatpush.msrb.mxu1 %v988_v53  ;;  %1099 = vmatpush.msrb.mxu3 %v989_v55 }
 0x280   : > { %1079 = vmatpush.msrb.mxu2 %v957_v54  ;;  %1040 = vmatpush.msrb.mxu0 %v954_v57 }
 0x281   : > { %v894_v26 = vmax.f32 %v892_v21, 0.0  ;;  %1060 = vmatpush.msrb.mxu1 %v986_v58  ;;  %1100 = vmatpush.msrb.mxu3 %v987_v62 }
 0x282   : > { %1080 = vmatpush.msrb.mxu2 %v955_v61 }
 0x283   : > { %v1693_v33 = vadd.f32 1e-05, %v894_v26 }
 0x284   : > { %v1695_v35 = vpop.eup %1292 }
 0x285   : > { %v898_v38 = vmul.f32 %v1695_v35, %v1688_v8  ;;  %1294 = vrsqrt.f32 %v1693_v33  ;;  %vm904_vm14 = vweird.f32 %v1695_v35  ;;  %vm913_vm15 = vweird.f32 %v1693_v33 }
 0x286   : > { %vm905_vm2 = vmor %vm903_vm1, %vm904_vm14 }
 0x287   : > { %v899_v48 = vmul.f32 %v1695_v35, %v898_v38 }
 0x289   : > { %v900_v59 = vmul.f32 0.5, %v899_v48 }
 0x28b   : > { %v1295_v56 = vpop.eup %1294  ;;  %v901_v2 = vsub.f32 1.5, %v900_v59 }
 0x28c   : > { %v908_v60 = vmul.f32 %v1295_v56, %v1693_v33  ;;  %vm914_vm13 = vweird.f32 %v1295_v56 }
 0x28d   : > { %v902_v50 = vmul.f32 %v1695_v35, %v901_v2  ;;  %vm915_vm0 = vmor %vm913_vm15, %vm914_vm13 }
 0x28e   : > { %v909_v37 = vmul.f32 %v1295_v56, %v908_v60 }
 0x28f   : > { %v906_v6 = vsel %vm905_vm2, %v1695_v35, %v902_v50 }
 0x290   : > { %v910_v63 = vmul.f32 0.5, %v909_v37 }
 0x292   : > { %v911_v0 = vsub.f32 1.5, %v910_v63 }
 0x294   : > { %v912_v39 = vmul.f32 %v1295_v56, %v911_v0 }
 0x296   : > { %v916_v1 = vsel %vm915_vm0, %v1295_v56, %v912_v39 }
 0x297   : > { %v919_v4 = vrot.slane %v916_v1, 4 }
 0x299   : > { %v920_v7 = vsel %vm423_vm5, %v906_v6, %v919_v4 }
 0x29a   : > { %v921_v9 = vrot.slane %v920_v7, 7 }
 0x29c   : > { %v923_v10 = vmul.f32 %v1666_v15, %v921_v9 }
 0x29e   : > { %v926_v12 = vperm.slane %v923_v10, 5  ;;  %v925_v13 = vperm.slane %v923_v10, 1 }
 0x2a0   : > { %v930_v16 = vmul.f32 %v926_v12, %v1686_v3  ;;  %v929_v18 = vmul.f32 %v925_v13, %v1682_v44  ;;  %v939_v19 = vperm.slane %v926_v12, 1  ;;  %v938_v24 = vperm.slane %v925_v13, 1 }
 0x2a2   : > { %v933_v17 = vrot.slane %v930_v16, 4  ;;  %v941_v27 = vmul.f32 %v939_v19, %v1676_v20  ;;  %v940_v28 = vmul.f32 %v938_v24, %v1670_v5 }
 0x2a4   : > { %v934_v21 = vsel %vm423_vm5, %v929_v18, %v933_v17 }
 0x2a5   : > { %v935_v8 = vrot.slane %v934_v21, 6 }
 0x2a7   : > { %v937_v23 = vsub.f32 %v1666_v15, %v935_v8  ;;  %v1217_v15 = vld [vmem:[%s1754_s2 + $0x18] sm:$0x77] }
 0x2a8   : > { %v1019_v44 = vperm.slane %v1217_v15, 0  ;;  %v1020_v20 = vperm.slane %v1217_v15, 4 }
 0x2a9   : > { %v943_v25 = vperm.slane %v937_v23, 2  ;;  %v944_v26 = vperm.slane %v937_v23, 6 }
 0x2aa   : > { %v1023_v32 = vperm.slane %v1019_v44, 0  ;;  %v1024_v34 = vperm.slane %v1020_v20, 0 }
 0x2ab   : > { %v947_v29 = vperm.slane %v943_v25, 2  ;;  %v948_v30 = vperm.slane %v944_v26, 2 }
 0x2ad   : > { %v949_v3 = vadd.f32 %v947_v29, %v940_v28  ;;  %v950_v31 = vadd.f32 %v948_v30, %v941_v27 }
 0x2af   : > { %1041 = vmatmul.f32.vlgmr.msrb.gmra.mxu0 %v949_v3  ;;  %1061 = vmatmul.f32.vlgmr.msrb.gmra.mxu1 %v950_v31 }
 0x2b0   : > { %1081 = vmatmul.f32.vlgmr.msrb.gmra.mxu2 %v949_v3  ;;  %1101 = vmatmul.f32.vlgmr.msrb.gmra.mxu3 %v950_v31 }
 0x32c   : > { %v1042_v33 = vpop.f32.mrf.mxu0  ;;  %v1062_v5 = vpop.f32.mrf.mxu1 }
 0x32d   : > { %v1043_v14 = vadd.f32 %v1042_v33, %v1023_v32 }
 0x32f   : > { %v1063_v52 = vadd.f32 %v1062_v5, %v1043_v14 }
 0x331   : > { %1105 = vst [vmem:[%s205_s7] sm:$0xff] %v1063_v52 }
 0x333   : > { %v1082_v35 = vpop.f32.mrf.mxu2  ;;  %v1102_v36 = vpop.f32.mrf.mxu3 }
 0x334   : > { %v1083_v11 = vadd.f32 %v1082_v35, %v1024_v34 }
 0x336   : > { %v1103_v22 = vadd.f32 %v1102_v36, %v1083_v11 }
 0x338   : > { %1106 = vst [vmem:[%s205_s7 + $0x8] sm:$0xff] %v1103_v22 }
 0x339   : > { %1383 = shalt.err (!%p1380_p8)
}
 0x33a   : > { %1231 = dma.vmem_to_hbm [thread:$0]  (%p1510_p12), %s1122_s8, 256, %s1124_s10, %s1108_s19  }
 0x33b PF: > { %p1248_p9 = scmp.ge.s32.totalorder %s1426_s15, 2  ;;  %s1135_s5 = sand.u32 1, %s1414_s12  }
 0x33c   : > { %s1136_s21 = scalar_lea.sflag [#allocation4], %s1135_s5 }
 0x33d   : > { %p1242_p10 = pnand %p1248_p9, %p1515_p2 }
 0x33f   : > { %p1243_p13 = pneg %p1242_p10 }
 0x341   : > { %1409 = dma.done.wait (%p1243_p13), %s1136_s21, 256  }
 0x342   : > { %1411 = vsyncadd (%p1243_p13), %s1136_s21, 4294967040  ;;  %p17_p0 = scmp.ge.s32.totalorder %s1490_s26, 6   ;;  %s1761_s12 = smov %s1418_s13 }
 0x343   : > { %s1762_s13 = smov %s1422_s14  ;;  %s1763_s14 = smov %s1502_s29 }
 0x344   : > { %s1764_s15 = smov %s1490_s26  ;;  %19 = sbr.rel (!%p17_p0) target bundleno = 6 (0x6), region = 87 }
 0x349   :  { %1142 = vsyncpa [#allocation3], 1 }
 0x34a   :  { %1144 = vsyncpa [#allocation3 + $0x1], 1 }
 0x34b   :  { %1145 = vsyncpa [#allocation6], 1 }
 0x34c   :  { %1146 = vsyncpa [#allocation4], 1 }
 0x34d   :  { %1148 = vsyncpa [#allocation4 + $0x1], 1 }

</bundles_post_ra>
